<compile_context>
chip_gen: v6e
topology: v6e:2x2x1
jax: 0.10.0
libtpu: 0.0.40
codegen_flags: <defaults>
</compile_context>

<pallas_src>
import functools

import jax
import jax.numpy as jnp
from jax.experimental import pallas as pl
from jax.experimental.pallas import tpu as pltpu

LANE = 128                        # pad all channel/code dims to the TPU lane width
VMEM_LIMIT = 32 * 1024 * 1024     # explicit scoped-VMEM bound (safe on v5e/v6e/v7x)


# ---------------------------------------------------------------------------
# small helpers
# ---------------------------------------------------------------------------
def _round_up(n, m=LANE):
    return ((n + m - 1) // m) * m


def _pick_tile(m, target=512):
    """Largest row tile <= target that divides m and keeps sublane alignment."""
    t = min(m, target)
    while t > 1:
        if m % t == 0 and (t % 8 == 0 or t == m):
            return t
        t -= 1
    return m


def _cparams(semantics):
    return pltpu.CompilerParams(dimension_semantics=semantics,
                                vmem_limit_bytes=VMEM_LIMIT)


# ---------------------------------------------------------------------------
# Pallas kernels
# ---------------------------------------------------------------------------
def _mm_bias_kernel(a_ref, b_ref, bias_ref, o_ref, *, relu):
    """o = a @ b + bias  (optionally ReLU); bf16 operands, f32 accumulation."""
    acc = jnp.dot(a_ref[...], b_ref[...], preferred_element_type=jnp.float32)
    acc = acc + bias_ref[...]
    if relu:
        acc = jnp.maximum(acc, 0.0)
    o_ref[...] = acc.astype(o_ref.dtype)


def _mm_bias_res_kernel(a_ref, b_ref, bias_ref, r_ref, o_ref, *, relu):
    """o = a @ b + bias + residual  (optionally ReLU)."""
    acc = jnp.dot(a_ref[...], b_ref[...], preferred_element_type=jnp.float32)
    acc = acc + bias_ref[...] + r_ref[...].astype(jnp.float32)
    if relu:
        acc = jnp.maximum(acc, 0.0)
    o_ref[...] = acc.astype(o_ref.dtype)


def _fused_vq_kernel(x_ref, w4_ref, b4_ref, e_ref, e2_ref, wd1_ref, bd1_ref,
                     d1_ref, loss_ref, perp_ref, cnt_acc, sq_acc,
                     *, n_total, d_real):
    """Fused: z = 1x1conv(x)+x  ->  VQ(z)  ->  d1 = relu(1x1conv(zq)+zq).

    MSE sum and per-code counts are accumulated across the row-tile grid and
    finalized on the last step (loss / perplexity written to SMEM outputs).
    """
    i = pl.program_id(0)

    @pl.when(i == 0)
    def _():
        cnt_acc[...] = jnp.zeros_like(cnt_acc)
        sq_acc[0] = jnp.float32(0.0)

    x = x_ref[...]                                                 # (tm, Ch) bf16
    # encoder residual 1x1 conv: z = x @ W4 + b4 + x   (f32)
    z = jnp.dot(x, w4_ref[...], preferred_element_type=jnp.float32)
    z = z + b4_ref[...] + x.astype(jnp.float32)                    # (tm, Cl)

    # nearest codebook entry. ||z||^2 dropped (argmin-invariant); e2 already
    # carries a +1e30 mask on padded code slots.
    e = e_ref[...]                                                 # (Kp, Cl) f32
    ze = jax.lax.dot_general(z, e, (((1,), (1,)), ((), ())),
                             preferred_element_type=jnp.float32)   # (tm, Kp)
    dist = e2_ref[...] - 2.0 * ze
    idx = jnp.argmin(dist, axis=1, keepdims=True)                  # (tm, 1)
    col = jax.lax.broadcasted_iota(jnp.int32, dist.shape, 1)
    onehot = (col == idx).astype(jnp.float32)                      # (tm, Kp)

    zq = jnp.dot(onehot, e, preferred_element_type=jnp.float32)    # (tm, Cl)

    diff = zq - z
    sq_acc[0] = sq_acc[0] + jnp.sum(diff * diff)
    cnt_acc[...] = cnt_acc[...] + jnp.sum(onehot, axis=0, keepdims=True)

    # decoder residual 1x1 conv: d1 = relu(zq @ Wd1 + bd1 + zq)
    d1 = jnp.dot(zq.astype(jnp.bfloat16), wd1_ref[...],
                 preferred_element_type=jnp.float32)
    d1 = d1 + bd1_ref[...] + zq
    d1_ref[...] = jnp.maximum(d1, 0.0).astype(d1_ref.dtype)

    @pl.when(i == pl.num_programs(0) - 1)
    def _():
        loss_ref[0] = sq_acc[0] * jnp.float32(1.0 / (n_total * d_real))
        avg = cnt_acc[...] * jnp.float32(1.0 / n_total)
        perp_ref[0] = jnp.exp(-jnp.sum(avg * jnp.log(avg + 1e-10)))


def _deconv_kernel(x_ref, w_ref, b_ref, o_ref, *, half):
    """k=2,s=2 transposed conv for one image row: GEMM, then lane-split the
    (di, dj, co) columns directly into the upsampled output slab."""
    y = jnp.dot(x_ref[...], w_ref[...], preferred_element_type=jnp.float32)
    y = (y + b_ref[...]).astype(o_ref.dtype)                       # (W, 4*Cp)
    o_ref[0] = y[:, :half]                                         # di = 0
    o_ref[1] = y[:, half:]                                         # di = 1


# ---------------------------------------------------------------------------
# Pallas wrappers
# ---------------------------------------------------------------------------
def mm_bias(a, w, b, *, relu=False, residual=None, out_dtype=jnp.bfloat16):
    """Fused (im2col-)GEMM: relu( a @ w + b [+ residual] ), row-tiled grid."""
    M, K = a.shape
    N = w.shape[1]
    tm = _pick_tile(M)
    grid = (M // tm,)
    b2 = b.reshape(1, N).astype(jnp.float32)

    a_spec = pl.BlockSpec((tm, K), lambda i: (i, 0))
    w_spec = pl.BlockSpec((K, N), lambda i: (0, 0))
    bias_spec = pl.BlockSpec((1, N), lambda i: (0, 0))
    out_spec = pl.BlockSpec((tm, N), lambda i: (i, 0))
    out_shape = jax.ShapeDtypeStruct((M, N), out_dtype)

    if residual is None:
        kern = functools.partial(_mm_bias_kernel, relu=relu)
        return pl.pallas_call(
            kern, out_shape=out_shape, grid=grid,
            in_specs=[a_spec, w_spec, bias_spec], out_specs=out_spec,
            compiler_params=_cparams(("parallel",)),
        )(a, w, b2)

    kern = functools.partial(_mm_bias_res_kernel, relu=relu)
    r_spec = pl.BlockSpec((tm, N), lambda i: (i, 0))
    return pl.pallas_call(
        kern, out_shape=out_shape, grid=grid,
        in_specs=[a_spec, w_spec, bias_spec, r_spec], out_specs=out_spec,
        compiler_params=_cparams(("parallel",)),
    )(a, w, b2, residual)


def fused_latent_vq(x3_flat, w4, b4, emb, e2m, wd1, bd1, *, latent_dim):
    """1x1 conv -> vector quantization -> 1x1 conv, single pallas_call."""
    M, Ch = x3_flat.shape
    Cl = w4.shape[1]
    Kp = emb.shape[0]
    tm = _pick_tile(M)
    grid = (M // tm,)

    kern = functools.partial(_fused_vq_kernel,
                             n_total=float(M), d_real=float(latent_dim))
    d1, loss, perp = pl.pallas_call(
        kern,
        out_shape=(jax.ShapeDtypeStruct((M, Ch), jnp.bfloat16),
                   jax.ShapeDtypeStruct((1,), jnp.float32),
                   jax.ShapeDtypeStruct((1,), jnp.float32)),
        grid=grid,
        in_specs=[pl.BlockSpec((tm, Ch), lambda i: (i, 0)),
                  pl.BlockSpec((Ch, Cl), lambda i: (0, 0)),
                  pl.BlockSpec((1, Cl), lambda i: (0, 0)),
                  pl.BlockSpec((Kp, Cl), lambda i: (0, 0)),
                  pl.BlockSpec((1, Kp), lambda i: (0, 0)),
                  pl.BlockSpec((Cl, Ch), lambda i: (0, 0)),
                  pl.BlockSpec((1, Ch), lambda i: (0, 0))],
        out_specs=(pl.BlockSpec((tm, Ch), lambda i: (i, 0)),
                   pl.BlockSpec(memory_space=pltpu.MemorySpace.SMEM),
                   pl.BlockSpec(memory_space=pltpu.MemorySpace.SMEM)),
        scratch_shapes=[pltpu.VMEM((1, Kp), jnp.float32),
                        pltpu.SMEM((1,), jnp.float32)],
        compiler_params=_cparams(("arbitrary",)),   # scalar accumulation axis
    )(x3_flat, w4, b4.reshape(1, Cl), emb, e2m, wd1, bd1.reshape(1, Ch))
    return d1, loss[0], perp[0]


def deconv2x2(x_nhwc, w_mat, b_vec):
    """ConvTranspose2d(k=2, s=2): GEMM per image row, output written directly in
    upsampled layout (B*H, 2, W, 2*Cp) -> free reshape to (B, 2H, 2W, Cp)."""
    B, H, W, Cin = x_nhwc.shape
    Cout4 = w_mat.shape[1]
    Cp = Cout4 // 4
    x3 = x_nhwc.reshape(B * H, W, Cin)
    b2 = b_vec.reshape(1, Cout4).astype(jnp.float32)

    out = pl.pallas_call(
        functools.partial(_deconv_kernel, half=2 * Cp),
        out_shape=jax.ShapeDtypeStruct((B * H, 2, W, 2 * Cp), jnp.bfloat16),
        grid=(B * H,),
        in_specs=[pl.BlockSpec((None, W, Cin), lambda i: (i, 0, 0)),
                  pl.BlockSpec((Cin, Cout4), lambda i: (0, 0)),
                  pl.BlockSpec((1, Cout4), lambda i: (0, 0))],
        out_specs=pl.BlockSpec((None, 2, W, 2 * Cp), lambda i: (i, 0, 0, 0)),
        compiler_params=_cparams(("parallel",)),
    )(x3, w_mat, b2)
    return out.reshape(B, 2 * H, 2 * W, Cp)


# ---------------------------------------------------------------------------
# JAX glue: im2col (bf16) / weight layout + lane padding (done once)
# ---------------------------------------------------------------------------
def im2col(x_nhwc, k, stride, pad):
    B, H, W, C = x_nhwc.shape
    xp = jnp.pad(x_nhwc, ((0, 0), (pad, pad), (pad, pad), (0, 0)))
    Ho = (H + 2 * pad - k) // stride + 1
    Wo = (W + 2 * pad - k) // stride + 1
    cols = []
    for di in range(k):
        for dj in range(k):
            cols.append(xp[:, di:di + Ho * stride:stride,
                           dj:dj + Wo * stride:stride, :])
    patches = jnp.concatenate(cols, axis=-1)        # (B,Ho,Wo,k*k*C), (di,dj,C) order
    return patches.reshape(B * Ho * Wo, k * k * C), (B, Ho, Wo)


def _pad_axis(a, n, axis):
    pad = n - a.shape[axis]
    if pad <= 0:
        return a
    widths = [(0, 0)] * a.ndim
    widths[axis] = (0, pad)
    return jnp.pad(a, widths)


def conv_w_mat(w, cin_pad, cout_pad):
    # torch Conv2d weight (Cout,Cin,kh,kw) -> bf16 (kh*kw*cin_pad, cout_pad)
    _, _, kh, kw = w.shape
    wt = jnp.transpose(w, (2, 3, 1, 0))             # (kh, kw, Cin, Cout)
    wt = _pad_axis(_pad_axis(wt, cin_pad, 2), cout_pad, 3)
    return wt.reshape(kh * kw * cin_pad, cout_pad).astype(jnp.bfloat16)


def deconv_w_mat(w, cin_pad, cout_pad):
    # torch ConvTranspose2d weight (Cin,Cout,kh,kw) -> bf16 (cin_pad, kh*kw*cout_pad)
    # with column order (di, dj, co) so the kernel writes the upsampled slab directly.
    _, _, kh, kw = w.shape
    wt = jnp.transpose(w, (0, 2, 3, 1))             # (Cin, kh, kw, Cout)
    wt = _pad_axis(_pad_axis(wt, cin_pad, 0), cout_pad, 3)
    return wt.reshape(cin_pad, kh * kw * cout_pad).astype(jnp.bfloat16)


def pad_bias(b, n):
    return _pad_axis(b.astype(jnp.float32), n, 0)


def prepare_params(p, in_dim, hidden, latent, n_emb):
    hp, lp, kp, op = _round_up(hidden), _round_up(latent), _round_up(n_emb), _round_up(in_dim)
    q = {}
    # Encoder
    q['e_w1'] = conv_w_mat(p['e_w1'], in_dim, hp); q['e_b1'] = pad_bias(p['e_b1'], hp)
    q['e_w2'] = conv_w_mat(p['e_w2'], hp, hp);     q['e_b2'] = pad_bias(p['e_b2'], hp)
    q['e_w3'] = conv_w_mat(p['e_w3'], hp, hp);     q['e_b3'] = pad_bias(p['e_b3'], hp)
    q['e_w4'] = conv_w_mat(p['e_w4'], hp, lp);     q['e_b4'] = pad_bias(p['e_b4'], lp)
    # Codebook (kept f32; ||e||^2 precomputed, padded code slots masked out)
    emb = _pad_axis(_pad_axis(p['emb'].astype(jnp.float32), kp, 0), lp, 1)
    q['emb'] = emb
    e2 = jnp.sum(emb * emb, axis=1)
    q['e2m'] = jnp.where(jnp.arange(kp) >= n_emb, 1e30, e2).reshape(1, kp).astype(jnp.float32)
    # Decoder
    q['d_w1'] = conv_w_mat(p['d_w1'], lp, hp);     q['d_b1'] = pad_bias(p['d_b1'], hp)
    q['d_w2'] = conv_w_mat(p['d_w2'], hp, hp);     q['d_b2'] = pad_bias(p['d_b2'], hp)
    q['d_tw1'] = deconv_w_mat(p['d_tw1'], hp, hp); q['d_tb1'] = jnp.tile(pad_bias(p['d_tb1'], hp), 4)
    q['d_tw2'] = deconv_w_mat(p['d_tw2'], hp, op); q['d_tb2'] = jnp.tile(pad_bias(p['d_tb2'], op), 4)
    return q


# ---------------------------------------------------------------------------
# VQ-VAE forward
# ---------------------------------------------------------------------------
def vqvae_forward(x_nchw, q, *, latent_dim):
    in_dim = x_nchw.shape[1]
    x = jnp.transpose(x_nchw, (0, 2, 3, 1)).astype(jnp.bfloat16)   # NCHW -> NHWC bf16

    # ------------------- Encoder -------------------
    a, (B, H1, W1) = im2col(x, 4, 2, 1)                            # strided conv 1
    x1 = mm_bias(a, q['e_w1'], q['e_b1']).reshape(B, H1, W1, -1)

    a, (B, H2, W2) = im2col(x1, 4, 2, 1)                           # strided conv 2 + relu
    x2_flat = mm_bias(a, q['e_w2'], q['e_b2'], relu=True)
    x2 = x2_flat.reshape(B, H2, W2, -1)

    a, _ = im2col(x2, 3, 1, 1)                                     # residual 3x3 conv
    x3_flat = mm_bias(a, q['e_w3'], q['e_b3'], relu=True, residual=x2_flat)

    # -------- fused: 1x1 conv -> VQ codebook -> 1x1 conv (one kernel) --------
    d1_flat, vq_loss, perplexity = fused_latent_vq(
        x3_flat, q['e_w4'], q['e_b4'], q['emb'], q['e2m'],
        q['d_w1'], q['d_b1'], latent_dim=latent_dim)
    commitment_loss = vq_loss
    codebook_loss = vq_loss     # identical in forward (detach only affects grads)

    # ------------------- Decoder -------------------
    d1 = d1_flat.reshape(B, H2, W2, -1)
    a, _ = im2col(d1, 3, 1, 1)                                     # residual 3x3 conv
    d2_flat = mm_bias(a, q['d_w2'], q['d_b2'], relu=True, residual=d1_flat)
    d2 = d2_flat.reshape(B, H2, W2, -1)

    y = deconv2x2(d2, q['d_tw1'], q['d_tb1'])                      # (B, 2H2, 2W2, hp)
    y = deconv2x2(y, q['d_tw2'], q['d_tb2'])                       # (B, 4H2, 4W2, op)

    x_hat = jnp.transpose(y[..., :in_dim], (0, 3, 1, 2)).astype(jnp.float32)
    return x_hat, commitment_loss, codebook_loss, perplexity


# ---------------------------------------------------------------------------
# Deterministic parameter init (torch-shaped, matches the nn.Module)
# ---------------------------------------------------------------------------
def init_params(key, in_dim, hidden, latent, n_emb):
    ks = jax.random.split(key, 20)
    w = lambda k, s: 0.1 * jax.random.normal(k, s, jnp.float32)
    p = {}
    # Encoder
    p['e_w1'] = w(ks[0], (hidden, in_dim, 4, 4)); p['e_b1'] = w(ks[1], (hidden,))
    p['e_w2'] = w(ks[2], (hidden, hidden, 4, 4)); p['e_b2'] = w(ks[3], (hidden,))
    p['e_w3'] = w(ks[4], (hidden, hidden, 3, 3)); p['e_b3'] = w(ks[5], (hidden,))
    p['e_w4'] = w(ks[6], (latent, hidden, 1, 1)); p['e_b4'] = w(ks[7], (latent,))
    # Codebook
    p['emb'] = w(ks[8], (n_emb, latent))
    # Decoder
    p['d_w1'] = w(ks[9], (hidden, latent, 1, 1));  p['d_b1'] = w(ks[10], (hidden,))
    p['d_w2'] = w(ks[11], (hidden, hidden, 3, 3)); p['d_b2'] = w(ks[12], (hidden,))
    p['d_tw1'] = w(ks[13], (hidden, hidden, 2, 2)); p['d_tb1'] = w(ks[14], (hidden,))
    p['d_tw2'] = w(ks[15], (hidden, in_dim, 2, 2)); p['d_tb2'] = w(ks[16], (in_dim,))
    return p


if __name__ == "__main__":
    key = jax.random.PRNGKey(0)
    B, Cin, H, W = 2, 4, 16, 16
    hidden = 32
    latent = 32          # must equal hidden (residual adds in Encoder/Decoder)
    n_embeddings = 32

    k_x, k_p = jax.random.split(key)
    x = jax.random.normal(k_x, (B, Cin, H, W), jnp.float32)
    raw = init_params(k_p, Cin, hidden, latent, n_embeddings)
    params = prepare_params(raw, Cin, hidden, latent, n_embeddings)

    fwd = jax.jit(functools.partial(vqvae_forward, latent_dim=latent))
    x_hat, commit_loss, cb_loss, perplexity = fwd(x, params)
    jax.block_until_ready((x_hat, commit_loss, cb_loss, perplexity))

    assert x_hat.shape == (B, Cin, H, W), x_hat.shape
    assert commit_loss.shape == () and cb_loss.shape == () and perplexity.shape == ()
    assert bool(jnp.all(jnp.isfinite(x_hat)))
    assert bool(jnp.isfinite(commit_loss)) and bool(jnp.isfinite(perplexity))
    print("KERNEL_OK")
</pallas_src>

<mosaic_0001>
module attributes {stable_mosaic.version = 11 : i64} {
  func.func @_mm_bias_kernel(%arg0: i32, %arg1: memref<128x64xbf16, #tpu.memory_space<vmem>>, %arg2: memref<64x128xbf16, #tpu.memory_space<vmem>>, %arg3: memref<1x128xf32, #tpu.memory_space<vmem>>, %arg4: memref<128x128xbf16, #tpu.memory_space<vmem>>) attributes {dimension_semantics = [#tpu.dimension_semantics<parallel>], iteration_bounds = array<i64: 1>, scalar_prefetch = 0 : i64, scratch_operands = 0 : i64, tpu.core_type = #tpu.core_type<tc>, window_params = [{transform_indices = @transform_0, window_bounds = array<i64: 128, 64>}, {pipeline_mode = #tpu.pipeline_mode<synchronous>, transform_indices = @transform_1, window_bounds = array<i64: 64, 128>}, {pipeline_mode = #tpu.pipeline_mode<synchronous>, transform_indices = @transform_2, window_bounds = array<i64: 1, 128>}, {transform_indices = @transform_3, window_bounds = array<i64: 128, 128>}]} {
    %c0 = arith.constant 0 : index
    %c0_0 = arith.constant 0 : index
    %0 = vector.load %arg1[%c0, %c0_0] : memref<128x64xbf16, #tpu.memory_space<vmem>>, vector<128x64xbf16>
    %c0_1 = arith.constant 0 : index
    %c0_2 = arith.constant 0 : index
    %1 = vector.load %arg2[%c0_1, %c0_2] : memref<64x128xbf16, #tpu.memory_space<vmem>>, vector<64x128xbf16>
    %cst = arith.constant dense<0.000000e+00> : vector<128x128xf32>
    %2 = tpu.matmul %0, %1, %cst {dimension_numbers = #tpu.dot_dimension_numbers<[1], [0], [0], [1], [0, 0, 1, 1], [], []>} : vector<128x64xbf16>, vector<64x128xbf16>, vector<128x128xf32> -> vector<128x128xf32>
    %c0_3 = arith.constant 0 : index
    %c0_4 = arith.constant 0 : index
    %3 = vector.load %arg3[%c0_3, %c0_4] : memref<1x128xf32, #tpu.memory_space<vmem>>, vector<1x128xf32>
    %4 = vector.broadcast %3 : vector<1x128xf32> to vector<128x128xf32>
    %5 = arith.addf %2, %4 : vector<128x128xf32>
    %6 = arith.truncf %5 : vector<128x128xf32> to vector<128x128xbf16>
    %c0_5 = arith.constant 0 : index
    %c0_6 = arith.constant 0 : index
    %7 = vector.load %arg4[%c0_5, %c0_6] : memref<128x128xbf16, #tpu.memory_space<vmem>>, vector<128x128xbf16>
    tpu.vector_store %arg4[%c0_5, %c0_6], %6 {strides = array<i32>} : memref<128x128xbf16, #tpu.memory_space<vmem>>, vector<128x128xbf16>,
    return
  }
  func.func @transform_0(%arg0: i32) -> (i32, i32) {
    %c0_i32 = arith.constant 0 : i32
    %c0_i32_0 = arith.constant 0 : i32
    return %arg0, %c0_i32 : i32, i32
  }
  func.func @transform_1(%arg0: i32) -> (i32, i32) {
    %c0_i32 = arith.constant 0 : i32
    %c0_i32_0 = arith.constant 0 : i32
    %c0_i32_1 = arith.constant 0 : i32
    return %c0_i32, %c0_i32_0 : i32, i32
  }
  func.func @transform_2(%arg0: i32) -> (i32, i32) {
    %c0_i32 = arith.constant 0 : i32
    %c0_i32_0 = arith.constant 0 : i32
    %c0_i32_1 = arith.constant 0 : i32
    return %c0_i32, %c0_i32_0 : i32, i32
  }
  func.func @transform_3(%arg0: i32) -> (i32, i32) {
    %c0_i32 = arith.constant 0 : i32
    %c0_i32_0 = arith.constant 0 : i32
    return %arg0, %c0_i32 : i32, i32
  }
}

module attributes {stable_mosaic.version = 11 : i64} {
  func.func @_mm_bias_kernel(%arg0: i32, %arg1: memref<32x2048xbf16, #tpu.memory_space<vmem>>, %arg2: memref<2048x128xbf16, #tpu.memory_space<vmem>>, %arg3: memref<1x128xf32, #tpu.memory_space<vmem>>, %arg4: memref<32x128xbf16, #tpu.memory_space<vmem>>) attributes {dimension_semantics = [#tpu.dimension_semantics<parallel>], iteration_bounds = array<i64: 1>, scalar_prefetch = 0 : i64, scratch_operands = 0 : i64, tpu.core_type = #tpu.core_type<tc>, window_params = [{transform_indices = @transform_0, window_bounds = array<i64: 32, 2048>}, {pipeline_mode = #tpu.pipeline_mode<synchronous>, transform_indices = @transform_1, window_bounds = array<i64: 2048, 128>}, {pipeline_mode = #tpu.pipeline_mode<synchronous>, transform_indices = @transform_2, window_bounds = array<i64: 1, 128>}, {transform_indices = @transform_3, window_bounds = array<i64: 32, 128>}]} {
    %c0 = arith.constant 0 : index
    %c0_0 = arith.constant 0 : index
    %0 = vector.load %arg1[%c0, %c0_0] : memref<32x2048xbf16, #tpu.memory_space<vmem>>, vector<32x2048xbf16>
    %c0_1 = arith.constant 0 : index
    %c0_2 = arith.constant 0 : index
    %1 = vector.load %arg2[%c0_1, %c0_2] : memref<2048x128xbf16, #tpu.memory_space<vmem>>, vector<2048x128xbf16>
    %cst = arith.constant dense<0.000000e+00> : vector<32x128xf32>
    %2 = tpu.matmul %0, %1, %cst {dimension_numbers = #tpu.dot_dimension_numbers<[1], [0], [0], [1], [0, 0, 1, 1], [], []>} : vector<32x2048xbf16>, vector<2048x128xbf16>, vector<32x128xf32> -> vector<32x128xf32>
    %c0_3 = arith.constant 0 : index
    %c0_4 = arith.constant 0 : index
    %3 = vector.load %arg3[%c0_3, %c0_4] : memref<1x128xf32, #tpu.memory_space<vmem>>, vector<1x128xf32>
    %4 = vector.broadcast %3 : vector<1x128xf32> to vector<32x128xf32>
    %5 = arith.addf %2, %4 : vector<32x128xf32>
    %cst_5 = arith.constant 0.000000e+00 : f32
    %6 = vector.broadcast %cst_5 : f32 to vector<32x128xf32>
    %7 = arith.maximumf %5, %6 : vector<32x128xf32>
    %8 = arith.truncf %7 : vector<32x128xf32> to vector<32x128xbf16>
    %c0_6 = arith.constant 0 : index
    %c0_7 = arith.constant 0 : index
    %9 = vector.load %arg4[%c0_6, %c0_7] : memref<32x128xbf16, #tpu.memory_space<vmem>>, vector<32x128xbf16>
    tpu.vector_store %arg4[%c0_6, %c0_7], %8 {strides = array<i32>} : memref<32x128xbf16, #tpu.memory_space<vmem>>, vector<32x128xbf16>,
    return
  }
  func.func @transform_0(%arg0: i32) -> (i32, i32) {
    %c0_i32 = arith.constant 0 : i32
    %c0_i32_0 = arith.constant 0 : i32
    return %arg0, %c0_i32 : i32, i32
  }
  func.func @transform_1(%arg0: i32) -> (i32, i32) {
    %c0_i32 = arith.constant 0 : i32
    %c0_i32_0 = arith.constant 0 : i32
    %c0_i32_1 = arith.constant 0 : i32
    return %c0_i32, %c0_i32_0 : i32, i32
  }
  func.func @transform_2(%arg0: i32) -> (i32, i32) {
    %c0_i32 = arith.constant 0 : i32
    %c0_i32_0 = arith.constant 0 : i32
    %c0_i32_1 = arith.constant 0 : i32
    return %c0_i32, %c0_i32_0 : i32, i32
  }
  func.func @transform_3(%arg0: i32) -> (i32, i32) {
    %c0_i32 = arith.constant 0 : i32
    %c0_i32_0 = arith.constant 0 : i32
    return %arg0, %c0_i32 : i32, i32
  }
}

module attributes {stable_mosaic.version = 11 : i64} {
  func.func @_fused_vq_kernel(%arg0: i32, %arg1: memref<32x128xbf16, #tpu.memory_space<vmem>>, %arg2: memref<128x128xbf16, #tpu.memory_space<vmem>>, %arg3: memref<1x128xf32, #tpu.memory_space<vmem>>, %arg4: memref<128x128xf32, #tpu.memory_space<vmem>>, %arg5: memref<1x128xf32, #tpu.memory_space<vmem>>, %arg6: memref<128x128xbf16, #tpu.memory_space<vmem>>, %arg7: memref<1x128xf32, #tpu.memory_space<vmem>>, %arg8: memref<32x128xbf16, #tpu.memory_space<vmem>>, %arg9: memref<1xf32, #tpu.memory_space<smem>>, %arg10: memref<1xf32, #tpu.memory_space<smem>>, %arg11: memref<1x128xf32, #tpu.memory_space<vmem>>, %arg12: memref<1xf32, #tpu.memory_space<smem>>) attributes {dimension_semantics = [#tpu.dimension_semantics<arbitrary>], iteration_bounds = array<i64: 1>, scalar_prefetch = 0 : i64, scratch_operands = 2 : i64, tpu.core_type = #tpu.core_type<tc>, window_params = [{transform_indices = @transform_0, window_bounds = array<i64: 32, 128>}, {pipeline_mode = #tpu.pipeline_mode<synchronous>, transform_indices = @transform_1, window_bounds = array<i64: 128, 128>}, {pipeline_mode = #tpu.pipeline_mode<synchronous>, transform_indices = @transform_2, window_bounds = array<i64: 1, 128>}, {pipeline_mode = #tpu.pipeline_mode<synchronous>, transform_indices = @transform_3, window_bounds = array<i64: 128, 128>}, {pipeline_mode = #tpu.pipeline_mode<synchronous>, transform_indices = @transform_4, window_bounds = array<i64: 1, 128>}, {pipeline_mode = #tpu.pipeline_mode<synchronous>, transform_indices = @transform_5, window_bounds = array<i64: 128, 128>}, {pipeline_mode = #tpu.pipeline_mode<synchronous>, transform_indices = @transform_6, window_bounds = array<i64: 1, 128>}, {transform_indices = @transform_7, window_bounds = array<i64: 32, 128>}, {transform_indices = @transform_8, window_bounds = array<i64: 1>}, {transform_indices = @transform_9, window_bounds = array<i64: 1>}]} {
    %c0_i32 = arith.constant 0 : i32
    %0 = arith.cmpi eq, %arg0, %c0_i32 : i32
    %1 = arith.extui %0 : i1 to i32
    %c0_i32_0 = arith.constant 0 : i32
    %2 = arith.cmpi ne, %1, %c0_i32_0 : i32
    scf.if %2 {
      %cst_31 = arith.constant 0.000000e+00 : f32
      %54 = vector.broadcast %cst_31 : f32 to vector<1x128xf32>
      %c0_32 = arith.constant 0 : index
      %c0_33 = arith.constant 0 : index
      %55 = vector.load %arg11[%c0_32, %c0_33] : memref<1x128xf32, #tpu.memory_space<vmem>>, vector<1x128xf32>
      tpu.vector_store %arg11[%c0_32, %c0_33], %54 {strides = array<i32>} : memref<1x128xf32, #tpu.memory_space<vmem>>, vector<1x128xf32>,
      %cst_34 = arith.constant 0.000000e+00 : f32
      %c0_35 = arith.constant 0 : index
      %56 = memref.load %arg12[%c0_35] : memref<1xf32, #tpu.memory_space<smem>>
      memref.store %cst_34, %arg12[%c0_35] : memref<1xf32, #tpu.memory_space<smem>>
    } else {
    }
    %c0 = arith.constant 0 : index
    %c0_1 = arith.constant 0 : index
    %3 = vector.load %arg1[%c0, %c0_1] : memref<32x128xbf16, #tpu.memory_space<vmem>>, vector<32x128xbf16>
    %c0_2 = arith.constant 0 : index
    %c0_3 = arith.constant 0 : index
    %4 = vector.load %arg2[%c0_2, %c0_3] : memref<128x128xbf16, #tpu.memory_space<vmem>>, vector<128x128xbf16>
    %cst = arith.constant dense<0.000000e+00> : vector<32x128xf32>
    %5 = tpu.matmul %3, %4, %cst {dimension_numbers = #tpu.dot_dimension_numbers<[1], [0], [0], [1], [0, 0, 1, 1], [], []>} : vector<32x128xbf16>, vector<128x128xbf16>, vector<32x128xf32> -> vector<32x128xf32>
    %c0_4 = arith.constant 0 : index
    %c0_5 = arith.constant 0 : index
    %6 = vector.load %arg3[%c0_4, %c0_5] : memref<1x128xf32, #tpu.memory_space<vmem>>, vector<1x128xf32>
    %7 = vector.broadcast %6 : vector<1x128xf32> to vector<32x128xf32>
    %8 = arith.addf %5, %7 : vector<32x128xf32>
    %9 = arith.extf %3 : vector<32x128xbf16> to vector<32x128xf32>
    %10 = arith.addf %8, %9 : vector<32x128xf32>
    %c0_6 = arith.constant 0 : index
    %c0_7 = arith.constant 0 : index
    %11 = vector.load %arg4[%c0_6, %c0_7] : memref<128x128xf32, #tpu.memory_space<vmem>>, vector<128x128xf32>
    %cst_8 = arith.constant dense<0.000000e+00> : vector<32x128xf32>
    %12 = tpu.matmul %10, %11, %cst_8 {dimension_numbers = #tpu.dot_dimension_numbers<[1], [1], [0], [0], [0, 0, 1, 0], [], []>} : vector<32x128xf32>, vector<128x128xf32>, vector<32x128xf32> -> vector<32x128xf32>
    %c0_9 = arith.constant 0 : index
    %c0_10 = arith.constant 0 : index
    %13 = vector.load %arg5[%c0_9, %c0_10] : memref<1x128xf32, #tpu.memory_space<vmem>>, vector<1x128xf32>
    %cst_11 = arith.constant 2.000000e+00 : f32
    %14 = vector.broadcast %cst_11 : f32 to vector<32x128xf32>
    %15 = arith.mulf %14, %12 : vector<32x128xf32>
    %16 = vector.broadcast %13 : vector<1x128xf32> to vector<32x128xf32>
    %17 = arith.subf %16, %15 : vector<32x128xf32>
    %18 = tpu.reduce_index %17 {axis = 1 : i32, kind = #tpu.reduction_kind<arg_min>} : vector<32x128xf32> -> vector<32xi32>
    %19 = vector.shape_cast %18 : vector<32xi32> to vector<32x1xi32>
    %20 = tpu.iota {dimensions = array<i32: 1>} : vector<32x128xi32>
    %21 = vector.broadcast %19 : vector<32x1xi32> to vector<32x128xi32>
    %22 = arith.cmpi eq, %20, %21 : vector<32x128xi32>
    %23 = arith.extui %22 : vector<32x128xi1> to vector<32x128xi32>
    %24 = arith.sitofp %23 : vector<32x128xi32> to vector<32x128xf32>
    %cst_12 = arith.constant dense<0.000000e+00> : vector<32x128xf32>
    %25 = tpu.matmul %24, %11, %cst_12 {dimension_numbers = #tpu.dot_dimension_numbers<[1], [0], [0], [1], [0, 0, 1, 1], [], []>} : vector<32x128xf32>, vector<128x128xf32>, vector<32x128xf32> -> vector<32x128xf32>
    %26 = arith.subf %25, %10 : vector<32x128xf32>
    %c0_13 = arith.constant 0 : index
    %27 = memref.load %arg12[%c0_13] : memref<1xf32, #tpu.memory_space<smem>>
    %28 = arith.mulf %26, %26 : vector<32x128xf32>
    %29 = vector.shape_cast %28 : vector<32x128xf32> to vector<1x32x128xf32>
    %cst_14 = arith.constant dense<0.000000e+00> : vector<1xf32>
    %30 = vector.multi_reduction <add>, %29, %cst_14 [1, 2] : vector<1x32x128xf32> to vector<1xf32>
    %31 = vector.shape_cast %30 : vector<1xf32> to vector<1x1x1xf32>
    %32 = vector.extract %31[0, 0, 0] : f32 from vector<1x1x1xf32>
    %33 = arith.addf %27, %32 : f32
    %c0_15 = arith.constant 0 : index
    %34 = memref.load %arg12[%c0_15] : memref<1xf32, #tpu.memory_space<smem>>
    memref.store %33, %arg12[%c0_15] : memref<1xf32, #tpu.memory_space<smem>>
    %c0_16 = arith.constant 0 : index
    %c0_17 = arith.constant 0 : index
    %35 = vector.load %arg11[%c0_16, %c0_17] : memref<1x128xf32, #tpu.memory_space<vmem>>, vector<1x128xf32>
    %cst_18 = arith.constant dense<0.000000e+00> : vector<128xf32>
    %36 = vector.multi_reduction <add>, %24, %cst_18 [0] : vector<32x128xf32> to vector<128xf32>
    %37 = vector.shape_cast %36 : vector<128xf32> to vector<1x128xf32>
    %38 = arith.addf %35, %37 : vector<1x128xf32>
    %c0_19 = arith.constant 0 : index
    %c0_20 = arith.constant 0 : index
    %39 = vector.load %arg11[%c0_19, %c0_20] : memref<1x128xf32, #tpu.memory_space<vmem>>, vector<1x128xf32>
    tpu.vector_store %arg11[%c0_19, %c0_20], %38 {strides = array<i32>} : memref<1x128xf32, #tpu.memory_space<vmem>>, vector<1x128xf32>,
    %40 = arith.truncf %25 : vector<32x128xf32> to vector<32x128xbf16>
    %c0_21 = arith.constant 0 : index
    %c0_22 = arith.constant 0 : index
    %41 = vector.load %arg6[%c0_21, %c0_22] : memref<128x128xbf16, #tpu.memory_space<vmem>>, vector<128x128xbf16>
    %cst_23 = arith.constant dense<0.000000e+00> : vector<32x128xf32>
    %42 = tpu.matmul %40, %41, %cst_23 {dimension_numbers = #tpu.dot_dimension_numbers<[1], [0], [0], [1], [0, 0, 1, 1], [], []>} : vector<32x128xbf16>, vector<128x128xbf16>, vector<32x128xf32> -> vector<32x128xf32>
    %c0_24 = arith.constant 0 : index
    %c0_25 = arith.constant 0 : index
    %43 = vector.load %arg7[%c0_24, %c0_25] : memref<1x128xf32, #tpu.memory_space<vmem>>, vector<1x128xf32>
    %44 = vector.broadcast %43 : vector<1x128xf32> to vector<32x128xf32>
    %45 = arith.addf %42, %44 : vector<32x128xf32>
    %46 = arith.addf %45, %25 : vector<32x128xf32>
    %cst_26 = arith.constant 0.000000e+00 : f32
    %47 = vector.broadcast %cst_26 : f32 to vector<32x128xf32>
    %48 = arith.maximumf %46, %47 : vector<32x128xf32>
    %49 = arith.truncf %48 : vector<32x128xf32> to vector<32x128xbf16>
    %c0_27 = arith.constant 0 : index
    %c0_28 = arith.constant 0 : index
    %50 = vector.load %arg8[%c0_27, %c0_28] : memref<32x128xbf16, #tpu.memory_space<vmem>>, vector<32x128xbf16>
    tpu.vector_store %arg8[%c0_27, %c0_28], %49 {strides = array<i32>} : memref<32x128xbf16, #tpu.memory_space<vmem>>, vector<32x128xbf16>,
    %c0_i32_29 = arith.constant 0 : i32
    %51 = arith.cmpi eq, %arg0, %c0_i32_29 : i32
    %52 = arith.extui %51 : i1 to i32
    %c0_i32_30 = arith.constant 0 : i32
    %53 = arith.cmpi ne, %52, %c0_i32_30 : i32
    scf.if %53 {
      %c0_31 = arith.constant 0 : index
      %54 = memref.load %arg12[%c0_31] : memref<1xf32, #tpu.memory_space<smem>>
      %cst_32 = arith.constant 9.765625E-4 : f32
      %55 = arith.mulf %54, %cst_32 : f32
      %c0_33 = arith.constant 0 : index
      %56 = memref.load %arg9[%c0_33] : memref<1xf32, #tpu.memory_space<smem>>
      memref.store %55, %arg9[%c0_33] : memref<1xf32, #tpu.memory_space<smem>>
      %c0_34 = arith.constant 0 : index
      %c0_35 = arith.constant 0 : index
      %57 = vector.load %arg11[%c0_34, %c0_35] : memref<1x128xf32, #tpu.memory_space<vmem>>, vector<1x128xf32>
      %cst_36 = arith.constant 3.125000e-02 : f32
      %58 = vector.broadcast %cst_36 : f32 to vector<1x128xf32>
      %59 = arith.mulf %57, %58 : vector<1x128xf32>
      %cst_37 = arith.constant 1.000000e-10 : f32
      %60 = vector.broadcast %cst_37 : f32 to vector<1x128xf32>
      %61 = arith.addf %59, %60 : vector<1x128xf32>
      %62 = math.log %61 : vector<1x128xf32>
      %63 = arith.mulf %59, %62 : vector<1x128xf32>
      %64 = vector.shape_cast %63 : vector<1x128xf32> to vector<1x1x128xf32>
      %cst_38 = arith.constant dense<0.000000e+00> : vector<1xf32>
      %65 = vector.multi_reduction <add>, %64, %cst_38 [1, 2] : vector<1x1x128xf32> to vector<1xf32>
      %66 = vector.shape_cast %65 : vector<1xf32> to vector<1x1x1xf32>
      %67 = vector.extract %66[0, 0, 0] : f32 from vector<1x1x1xf32>
      %cst_39 = arith.constant 0.000000e+00 : f32
      %68 = arith.subf %cst_39, %67 : f32
      %69 = math.exp %68 : f32
      %c0_40 = arith.constant 0 : index
      %70 = memref.load %arg10[%c0_40] : memref<1xf32, #tpu.memory_space<smem>>
      memref.store %69, %arg10[%c0_40] : memref<1xf32, #tpu.memory_space<smem>>
    } else {
    }
    return
  }
  func.func @transform_0(%arg0: i32) -> (i32, i32) {
    %c0_i32 = arith.constant 0 : i32
    %c0_i32_0 = arith.constant 0 : i32
    return %arg0, %c0_i32 : i32, i32
  }
  func.func @transform_1(%arg0: i32) -> (i32, i32) {
    %c0_i32 = arith.constant 0 : i32
    %c0_i32_0 = arith.constant 0 : i32
    %c0_i32_1 = arith.constant 0 : i32
    return %c0_i32, %c0_i32_0 : i32, i32
  }
  func.func @transform_2(%arg0: i32) -> (i32, i32) {
    %c0_i32 = arith.constant 0 : i32
    %c0_i32_0 = arith.constant 0 : i32
    %c0_i32_1 = arith.constant 0 : i32
    return %c0_i32, %c0_i32_0 : i32, i32
  }
  func.func @transform_3(%arg0: i32) -> (i32, i32) {
    %c0_i32 = arith.constant 0 : i32
    %c0_i32_0 = arith.constant 0 : i32
    %c0_i32_1 = arith.constant 0 : i32
    return %c0_i32, %c0_i32_0 : i32, i32
  }
  func.func @transform_4(%arg0: i32) -> (i32, i32) {
    %c0_i32 = arith.constant 0 : i32
    %c0_i32_0 = arith.constant 0 : i32
    %c0_i32_1 = arith.constant 0 : i32
    return %c0_i32, %c0_i32_0 : i32, i32
  }
  func.func @transform_5(%arg0: i32) -> (i32, i32) {
    %c0_i32 = arith.constant 0 : i32
    %c0_i32_0 = arith.constant 0 : i32
    %c0_i32_1 = arith.constant 0 : i32
    return %c0_i32, %c0_i32_0 : i32, i32
  }
  func.func @transform_6(%arg0: i32) -> (i32, i32) {
    %c0_i32 = arith.constant 0 : i32
    %c0_i32_0 = arith.constant 0 : i32
    %c0_i32_1 = arith.constant 0 : i32
    return %c0_i32, %c0_i32_0 : i32, i32
  }
  func.func @transform_7(%arg0: i32) -> (i32, i32) {
    %c0_i32 = arith.constant 0 : i32
    %c0_i32_0 = arith.constant 0 : i32
    return %arg0, %c0_i32 : i32, i32
  }
  func.func @transform_8(%arg0: i32) -> i32 {
    %c0_i32 = arith.constant 0 : i32
    %c0_i32_0 = arith.constant 0 : i32
    return %c0_i32 : i32
  }
  func.func @transform_9(%arg0: i32) -> i32 {
    %c0_i32 = arith.constant 0 : i32
    %c0_i32_0 = arith.constant 0 : i32
    return %c0_i32 : i32
  }
}

module attributes {stable_mosaic.version = 11 : i64} {
  func.func @_deconv_kernel(%arg0: i32, %arg1: memref<1x4x128xbf16, #tpu.memory_space<vmem>>, %arg2: memref<128x512xbf16, #tpu.memory_space<vmem>>, %arg3: memref<1x512xf32, #tpu.memory_space<vmem>>, %arg4: memref<1x2x4x256xbf16, #tpu.memory_space<vmem>>) attributes {dimension_semantics = [#tpu.dimension_semantics<parallel>], iteration_bounds = array<i64: 8>, scalar_prefetch = 0 : i64, scratch_operands = 0 : i64, tpu.core_type = #tpu.core_type<tc>, window_params = [{transform_indices = @transform_0, window_bounds = array<i64: 1, 4, 128>}, {pipeline_mode = #tpu.pipeline_mode<synchronous>, transform_indices = @transform_1, window_bounds = array<i64: 128, 512>}, {pipeline_mode = #tpu.pipeline_mode<synchronous>, transform_indices = @transform_2, window_bounds = array<i64: 1, 512>}, {transform_indices = @transform_3, window_bounds = array<i64: 1, 2, 4, 256>}]} {
    %c0 = arith.constant 0 : index
    %c0_0 = arith.constant 0 : index
    %c0_1 = arith.constant 0 : index
    %0 = vector.load %arg1[%c0, %c0_0, %c0_1] : memref<1x4x128xbf16, #tpu.memory_space<vmem>>, vector<1x4x128xbf16>
    %1 = vector.shape_cast %0 : vector<1x4x128xbf16> to vector<4x128xbf16>
    %c0_2 = arith.constant 0 : index
    %c0_3 = arith.constant 0 : index
    %2 = vector.load %arg2[%c0_2, %c0_3] : memref<128x512xbf16, #tpu.memory_space<vmem>>, vector<128x512xbf16>
    %cst = arith.constant dense<0.000000e+00> : vector<4x512xf32>
    %3 = tpu.matmul %1, %2, %cst {dimension_numbers = #tpu.dot_dimension_numbers<[1], [0], [0], [1], [0, 0, 1, 1], [], []>} : vector<4x128xbf16>, vector<128x512xbf16>, vector<4x512xf32> -> vector<4x512xf32>
    %c0_4 = arith.constant 0 : index
    %c0_5 = arith.constant 0 : index
    %4 = vector.load %arg3[%c0_4, %c0_5] : memref<1x512xf32, #tpu.memory_space<vmem>>, vector<1x512xf32>
    %5 = vector.broadcast %4 : vector<1x512xf32> to vector<4x512xf32>
    %6 = arith.addf %3, %5 : vector<4x512xf32>
    %7 = arith.truncf %6 : vector<4x512xf32> to vector<4x512xbf16>
    %8 = vector.extract_strided_slice %7 {offsets = [0, 0], sizes = [4, 256], strides = [1, 1]} : vector<4x512xbf16> to vector<4x256xbf16>
    %c0_6 = arith.constant 0 : index
    %c0_7 = arith.constant 0 : index
    %c0_8 = arith.constant 0 : index
    %c0_9 = arith.constant 0 : index
    %9 = vector.load %arg4[%c0_6, %c0_7, %c0_8, %c0_9] : memref<1x2x4x256xbf16, #tpu.memory_space<vmem>>, vector<1x1x4x256xbf16>
    %10 = vector.shape_cast %9 : vector<1x1x4x256xbf16> to vector<4x256xbf16>
    %11 = vector.shape_cast %8 : vector<4x256xbf16> to vector<1x1x4x256xbf16>
    tpu.vector_store %arg4[%c0_6, %c0_7, %c0_8, %c0_9], %11 {strides = array<i32>} : memref<1x2x4x256xbf16, #tpu.memory_space<vmem>>, vector<1x1x4x256xbf16>,
    %12 = vector.extract_strided_slice %7 {offsets = [0, 256], sizes = [4, 256], strides = [1, 1]} : vector<4x512xbf16> to vector<4x256xbf16>
    %c0_10 = arith.constant 0 : index
    %c1 = arith.constant 1 : index
    %c0_11 = arith.constant 0 : index
    %c0_12 = arith.constant 0 : index
    %13 = vector.load %arg4[%c0_10, %c1, %c0_11, %c0_12] : memref<1x2x4x256xbf16, #tpu.memory_space<vmem>>, vector<1x1x4x256xbf16>
    %14 = vector.shape_cast %13 : vector<1x1x4x256xbf16> to vector<4x256xbf16>
    %15 = vector.shape_cast %12 : vector<4x256xbf16> to vector<1x1x4x256xbf16>
    tpu.vector_store %arg4[%c0_10, %c1, %c0_11, %c0_12], %15 {strides = array<i32>} : memref<1x2x4x256xbf16, #tpu.memory_space<vmem>>, vector<1x1x4x256xbf16>,
    return
  }
  func.func @transform_0(%arg0: i32) -> (i32, i32, i32) {
    %c0_i32 = arith.constant 0 : i32
    %c0_i32_0 = arith.constant 0 : i32
    %c0_i32_1 = arith.constant 0 : i32
    return %arg0, %c0_i32, %c0_i32_0 : i32, i32, i32
  }
  func.func @transform_1(%arg0: i32) -> (i32, i32) {
    %c0_i32 = arith.constant 0 : i32
    %c0_i32_0 = arith.constant 0 : i32
    %c0_i32_1 = arith.constant 0 : i32
    return %c0_i32, %c0_i32_0 : i32, i32
  }
  func.func @transform_2(%arg0: i32) -> (i32, i32) {
    %c0_i32 = arith.constant 0 : i32
    %c0_i32_0 = arith.constant 0 : i32
    %c0_i32_1 = arith.constant 0 : i32
    return %c0_i32, %c0_i32_0 : i32, i32
  }
  func.func @transform_3(%arg0: i32) -> (i32, i32, i32, i32) {
    %c0_i32 = arith.constant 0 : i32
    %c0_i32_0 = arith.constant 0 : i32
    %c0_i32_1 = arith.constant 0 : i32
    %c0_i32_2 = arith.constant 0 : i32
    return %arg0, %c0_i32, %c0_i32_0, %c0_i32_1 : i32, i32, i32, i32
  }
}

module attributes {stable_mosaic.version = 11 : i64} {
  func.func @_mm_bias_res_kernel(%arg0: i32, %arg1: memref<32x1152xbf16, #tpu.memory_space<vmem>>, %arg2: memref<1152x128xbf16, #tpu.memory_space<vmem>>, %arg3: memref<1x128xf32, #tpu.memory_space<vmem>>, %arg4: memref<32x128xbf16, #tpu.memory_space<vmem>>, %arg5: memref<32x128xbf16, #tpu.memory_space<vmem>>) attributes {dimension_semantics = [#tpu.dimension_semantics<parallel>], iteration_bounds = array<i64: 1>, scalar_prefetch = 0 : i64, scratch_operands = 0 : i64, tpu.core_type = #tpu.core_type<tc>, window_params = [{transform_indices = @transform_0, window_bounds = array<i64: 32, 1152>}, {pipeline_mode = #tpu.pipeline_mode<synchronous>, transform_indices = @transform_1, window_bounds = array<i64: 1152, 128>}, {pipeline_mode = #tpu.pipeline_mode<synchronous>, transform_indices = @transform_2, window_bounds = array<i64: 1, 128>}, {transform_indices = @transform_3, window_bounds = array<i64: 32, 128>}, {transform_indices = @transform_4, window_bounds = array<i64: 32, 128>}]} {
    %c0 = arith.constant 0 : index
    %c0_0 = arith.constant 0 : index
    %0 = vector.load %arg1[%c0, %c0_0] : memref<32x1152xbf16, #tpu.memory_space<vmem>>, vector<32x1152xbf16>
    %c0_1 = arith.constant 0 : index
    %c0_2 = arith.constant 0 : index
    %1 = vector.load %arg2[%c0_1, %c0_2] : memref<1152x128xbf16, #tpu.memory_space<vmem>>, vector<1152x128xbf16>
    %cst = arith.constant dense<0.000000e+00> : vector<32x128xf32>
    %2 = tpu.matmul %0, %1, %cst {dimension_numbers = #tpu.dot_dimension_numbers<[1], [0], [0], [1], [0, 0, 1, 1], [], []>} : vector<32x1152xbf16>, vector<1152x128xbf16>, vector<32x128xf32> -> vector<32x128xf32>
    %c0_3 = arith.constant 0 : index
    %c0_4 = arith.constant 0 : index
    %3 = vector.load %arg3[%c0_3, %c0_4] : memref<1x128xf32, #tpu.memory_space<vmem>>, vector<1x128xf32>
    %4 = vector.broadcast %3 : vector<1x128xf32> to vector<32x128xf32>
    %5 = arith.addf %2, %4 : vector<32x128xf32>
    %c0_5 = arith.constant 0 : index
    %c0_6 = arith.constant 0 : index
    %6 = vector.load %arg4[%c0_5, %c0_6] : memref<32x128xbf16, #tpu.memory_space<vmem>>, vector<32x128xbf16>
    %7 = arith.extf %6 : vector<32x128xbf16> to vector<32x128xf32>
    %8 = arith.addf %5, %7 : vector<32x128xf32>
    %cst_7 = arith.constant 0.000000e+00 : f32
    %9 = vector.broadcast %cst_7 : f32 to vector<32x128xf32>
    %10 = arith.maximumf %8, %9 : vector<32x128xf32>
    %11 = arith.truncf %10 : vector<32x128xf32> to vector<32x128xbf16>
    %c0_8 = arith.constant 0 : index
    %c0_9 = arith.constant 0 : index
    %12 = vector.load %arg5[%c0_8, %c0_9] : memref<32x128xbf16, #tpu.memory_space<vmem>>, vector<32x128xbf16>
    tpu.vector_store %arg5[%c0_8, %c0_9], %11 {strides = array<i32>} : memref<32x128xbf16, #tpu.memory_space<vmem>>, vector<32x128xbf16>,
    return
  }
  func.func @transform_0(%arg0: i32) -> (i32, i32) {
    %c0_i32 = arith.constant 0 : i32
    %c0_i32_0 = arith.constant 0 : i32
    return %arg0, %c0_i32 : i32, i32
  }
  func.func @transform_1(%arg0: i32) -> (i32, i32) {
    %c0_i32 = arith.constant 0 : i32
    %c0_i32_0 = arith.constant 0 : i32
    %c0_i32_1 = arith.constant 0 : i32
    return %c0_i32, %c0_i32_0 : i32, i32
  }
  func.func @transform_2(%arg0: i32) -> (i32, i32) {
    %c0_i32 = arith.constant 0 : i32
    %c0_i32_0 = arith.constant 0 : i32
    %c0_i32_1 = arith.constant 0 : i32
    return %c0_i32, %c0_i32_0 : i32, i32
  }
  func.func @transform_3(%arg0: i32) -> (i32, i32) {
    %c0_i32 = arith.constant 0 : i32
    %c0_i32_0 = arith.constant 0 : i32
    return %arg0, %c0_i32 : i32, i32
  }
  func.func @transform_4(%arg0: i32) -> (i32, i32) {
    %c0_i32 = arith.constant 0 : i32
    %c0_i32_0 = arith.constant 0 : i32
    return %arg0, %c0_i32 : i32, i32
  }
}

module attributes {stable_mosaic.version = 11 : i64} {
  func.func @_deconv_kernel(%arg0: i32, %arg1: memref<1x8x128xbf16, #tpu.memory_space<vmem>>, %arg2: memref<128x512xbf16, #tpu.memory_space<vmem>>, %arg3: memref<1x512xf32, #tpu.memory_space<vmem>>, %arg4: memref<1x2x8x256xbf16, #tpu.memory_space<vmem>>) attributes {dimension_semantics = [#tpu.dimension_semantics<parallel>], iteration_bounds = array<i64: 16>, scalar_prefetch = 0 : i64, scratch_operands = 0 : i64, tpu.core_type = #tpu.core_type<tc>, window_params = [{transform_indices = @transform_0, window_bounds = array<i64: 1, 8, 128>}, {pipeline_mode = #tpu.pipeline_mode<synchronous>, transform_indices = @transform_1, window_bounds = array<i64: 128, 512>}, {pipeline_mode = #tpu.pipeline_mode<synchronous>, transform_indices = @transform_2, window_bounds = array<i64: 1, 512>}, {transform_indices = @transform_3, window_bounds = array<i64: 1, 2, 8, 256>}]} {
    %c0 = arith.constant 0 : index
    %c0_0 = arith.constant 0 : index
    %c0_1 = arith.constant 0 : index
    %0 = vector.load %arg1[%c0, %c0_0, %c0_1] : memref<1x8x128xbf16, #tpu.memory_space<vmem>>, vector<1x8x128xbf16>
    %1 = vector.shape_cast %0 : vector<1x8x128xbf16> to vector<8x128xbf16>
    %c0_2 = arith.constant 0 : index
    %c0_3 = arith.constant 0 : index
    %2 = vector.load %arg2[%c0_2, %c0_3] : memref<128x512xbf16, #tpu.memory_space<vmem>>, vector<128x512xbf16>
    %cst = arith.constant dense<0.000000e+00> : vector<8x512xf32>
    %3 = tpu.matmul %1, %2, %cst {dimension_numbers = #tpu.dot_dimension_numbers<[1], [0], [0], [1], [0, 0, 1, 1], [], []>} : vector<8x128xbf16>, vector<128x512xbf16>, vector<8x512xf32> -> vector<8x512xf32>
    %c0_4 = arith.constant 0 : index
    %c0_5 = arith.constant 0 : index
    %4 = vector.load %arg3[%c0_4, %c0_5] : memref<1x512xf32, #tpu.memory_space<vmem>>, vector<1x512xf32>
    %5 = vector.broadcast %4 : vector<1x512xf32> to vector<8x512xf32>
    %6 = arith.addf %3, %5 : vector<8x512xf32>
    %7 = arith.truncf %6 : vector<8x512xf32> to vector<8x512xbf16>
    %8 = vector.extract_strided_slice %7 {offsets = [0, 0], sizes = [8, 256], strides = [1, 1]} : vector<8x512xbf16> to vector<8x256xbf16>
    %c0_6 = arith.constant 0 : index
    %c0_7 = arith.constant 0 : index
    %c0_8 = arith.constant 0 : index
    %c0_9 = arith.constant 0 : index
    %9 = vector.load %arg4[%c0_6, %c0_7, %c0_8, %c0_9] : memref<1x2x8x256xbf16, #tpu.memory_space<vmem>>, vector<1x1x8x256xbf16>
    %10 = vector.shape_cast %9 : vector<1x1x8x256xbf16> to vector<8x256xbf16>
    %11 = vector.shape_cast %8 : vector<8x256xbf16> to vector<1x1x8x256xbf16>
    tpu.vector_store %arg4[%c0_6, %c0_7, %c0_8, %c0_9], %11 {strides = array<i32>} : memref<1x2x8x256xbf16, #tpu.memory_space<vmem>>, vector<1x1x8x256xbf16>,
    %12 = vector.extract_strided_slice %7 {offsets = [0, 256], sizes = [8, 256], strides = [1, 1]} : vector<8x512xbf16> to vector<8x256xbf16>
    %c0_10 = arith.constant 0 : index
    %c1 = arith.constant 1 : index
    %c0_11 = arith.constant 0 : index
    %c0_12 = arith.constant 0 : index
    %13 = vector.load %arg4[%c0_10, %c1, %c0_11, %c0_12] : memref<1x2x8x256xbf16, #tpu.memory_space<vmem>>, vector<1x1x8x256xbf16>
    %14 = vector.shape_cast %13 : vector<1x1x8x256xbf16> to vector<8x256xbf16>
    %15 = vector.shape_cast %12 : vector<8x256xbf16> to vector<1x1x8x256xbf16>
    tpu.vector_store %arg4[%c0_10, %c1, %c0_11, %c0_12], %15 {strides = array<i32>} : memref<1x2x8x256xbf16, #tpu.memory_space<vmem>>, vector<1x1x8x256xbf16>,
    return
  }
  func.func @transform_0(%arg0: i32) -> (i32, i32, i32) {
    %c0_i32 = arith.constant 0 : i32
    %c0_i32_0 = arith.constant 0 : i32
    %c0_i32_1 = arith.constant 0 : i32
    return %arg0, %c0_i32, %c0_i32_0 : i32, i32, i32
  }
  func.func @transform_1(%arg0: i32) -> (i32, i32) {
    %c0_i32 = arith.constant 0 : i32
    %c0_i32_0 = arith.constant 0 : i32
    %c0_i32_1 = arith.constant 0 : i32
    return %c0_i32, %c0_i32_0 : i32, i32
  }
  func.func @transform_2(%arg0: i32) -> (i32, i32) {
    %c0_i32 = arith.constant 0 : i32
    %c0_i32_0 = arith.constant 0 : i32
    %c0_i32_1 = arith.constant 0 : i32
    return %c0_i32, %c0_i32_0 : i32, i32
  }
  func.func @transform_3(%arg0: i32) -> (i32, i32, i32, i32) {
    %c0_i32 = arith.constant 0 : i32
    %c0_i32_0 = arith.constant 0 : i32
    %c0_i32_1 = arith.constant 0 : i32
    %c0_i32_2 = arith.constant 0 : i32
    return %arg0, %c0_i32, %c0_i32_0, %c0_i32_1 : i32, i32, i32, i32
  }
}

</mosaic_0001>

<bundles_post_ra>
// kernel: vqvae_forward.7
= control target key start
LH: loop header
LB: loop body
LE: loop exit
PB: predicated region body
PF: predicated region fallthrough
CT: control target
= control target key end

     0   :  { %vm110_vm0 = vcmask 523264   ;;  %s563_s1 = inlined_call_operand.vmem [shape: bf16[64,128], index: 1, kind: input, shape index: {}]   ;;  %s564_s0 = inlined_call_operand.vmem [shape: bf16[128,64], index: 0, kind: input, shape index: {}]   ;;  %s565_s2 = inlined_call_operand.vmem [shape: f32[1,128], index: 2, kind: input, shape index: {}]   ;;  %s566_s3 = inlined_call_operand.vmem [shape: bf16[128,128], index: 3, kind: output, shape index: {}]  }
   0x1   :  { %v460_v0 = vld [vmem:[%s563_s1 + $0x18] sm:$0xff]   ;;  %v461_v1 = vld [vmem:[%s563_s1 + $0x10] sm:$0xff]   ;;  %v462_v2 = vld [vmem:[%s563_s1 + $0x8] sm:$0xff]  }
   0x2   :  { %428 = vmatprep.subr.bf16.mxu0 %v460_v0  ;;  %452 = vmatprep.subr.bf16.mxu1 %v460_v0  ;;  %v464_v3 = vld [vmem:[%s564_s0] sm:$0xff]   ;;  %v466_v6 = vld [vmem:[%s564_s0 + $0x8] sm:$0xff]   ;;  %v468_v8 = vld [vmem:[%s564_s0 + $0x10] sm:$0xff]  }
   0x3   :  { %429 = vmatpush3.bf16.msra.mxu0 %v460_v0  ;;  %456 = vmatpush3.bf16.msra.mxu1 %v460_v0  ;;  %v465_v4 = vld [vmem:[%s564_s0 + $0x20] sm:$0xff]   ;;  %v467_v7 = vld [vmem:[%s564_s0 + $0x28] sm:$0xff]   ;;  %v469_v9 = vld [vmem:[%s564_s0 + $0x30] sm:$0xff]  }
   0x4   :  { %430 = vmatprep.subr.bf16.mxu0 %v461_v1  ;;  %453 = vmatprep.subr.bf16.mxu1 %v461_v1  ;;  %v463_v5 = vld [vmem:[%s563_s1] sm:$0xff]   ;;  %v470_v10 = vld [vmem:[%s564_s0 + $0x18] sm:$0xff]  }
   0x5   :  { %436 = vmatprep.mubr.msk.bf16.mxu0 %vm110_vm0, %v464_v3  ;;  %444 = vmatprep.mubr.msk.bf16.mxu1 %vm110_vm0, %v465_v4  ;;  %v471_v11 = vld [vmem:[%s564_s0 + $0x38] sm:$0xff]   ;;  %v316_v14 = vld [vmem:[%s565_s2] ss:$0 sm:$0xff] }
   0x7   :  { %431 = vmatpush3.bf16.msra.mxu0 %v461_v1  ;;  %457 = vmatpush3.bf16.msra.mxu1 %v461_v1 }
   0x8   :  { %432 = vmatprep.subr.bf16.mxu0 %v462_v2  ;;  %454 = vmatprep.subr.bf16.mxu1 %v462_v2 }
   0xb   :  { %433 = vmatpush3.bf16.msra.mxu0 %v462_v2  ;;  %458 = vmatpush3.bf16.msra.mxu1 %v462_v2 }
   0xc   :  { %434 = vmatprep.subr.bf16.mxu0 %v463_v5  ;;  %455 = vmatprep.subr.bf16.mxu1 %v463_v5 }
   0xf   :  { %435 = vmatpush3.bf16.msra.mxu0 %v463_v5  ;;  %459 = vmatpush3.bf16.msra.mxu1 %v463_v5 }
  0x12   :  { %437 = vmatmul.mubr.msk.bf16.vlgmr.msra.gmra.mxu0 %vm110_vm0, %v466_v6  ;;  %445 = vmatmul.mubr.msk.bf16.vlgmr.msra.gmra.mxu1 %vm110_vm0, %v467_v7 }
  0x13   :  { %440 = vmatprep.mubr.msk.bf16.mxu0 %vm110_vm0, %v468_v8  ;;  %448 = vmatprep.mubr.msk.bf16.mxu1 %vm110_vm0, %v469_v9 }
  0x1a   :  { %441 = vmatmul.mubr.msk.bf16.gmra.mxu0 %vm110_vm0, %v470_v10  ;;  %449 = vmatmul.mubr.msk.bf16.gmra.mxu1 %vm110_vm0, %v471_v11 }
  0xd2   :  { %v438_v12 = vpop.f32.mrf.mxu0  ;;  %v446_v13 = vpop.f32.mrf.mxu1 }
  0xd3   :  { %v178_v19 = vadd.f32 %v438_v12, %v316_v14  ;;  %v210_v20 = vadd.f32 %v446_v13, %v316_v14 }
  0xd4   :  { %v169_v15 = vpop.f32.mrf.mxu0  ;;  %v201_v16 = vpop.f32.mrf.mxu1 }
  0xd5   :  { %v170_v23 = vadd.f32 %v316_v14, %v169_v15  ;;  %v202_v24 = vadd.f32 %v316_v14, %v201_v16 }
  0xd6   :  { %v439_v17 = vpop.f32.mrf.mxu0  ;;  %v447_v18 = vpop.f32.mrf.mxu1 }
  0xd7   :  { %v181_v21 = vadd.f32 %v439_v17, %v316_v14  ;;  %v213_v22 = vadd.f32 %v447_v18, %v316_v14 }
  0xd8   :  { %v172_v25 = vpop.f32.mrf.mxu0  ;;  %v204_v26 = vpop.f32.mrf.mxu1 }
  0xd9   :  { %v377_v27 = vpack.c.bf16 %v181_v21, %v178_v19  ;;  %v397_v28 = vpack.c.bf16 %v213_v22, %v210_v20  ;;  %v173_v29 = vadd.f32 %v316_v14, %v172_v25  ;;  %v205_v30 = vadd.f32 %v316_v14, %v204_v26 }
  0xda   :  { %v442_v31 = vpop.f32.mrf.mxu0  ;;  %v450_v32 = vpop.f32.mrf.mxu1 }
  0xdb   :  { %409 = vst [vmem:[%s566_s3 + $0x8] sm:$0xff] %v377_v27   ;;  %413 = vst [vmem:[%s566_s3 + $0x28] sm:$0xff] %v397_v28   ;;  %v372_v33 = vpack.c.bf16 %v173_v29, %v170_v23  ;;  %v392_v34 = vpack.c.bf16 %v205_v30, %v202_v24  ;;  %v194_v39 = vadd.f32 %v442_v31, %v316_v14 }
  0xdc   :  { %v185_v35 = vpop.f32.mrf.mxu0  ;;  %v217_v36 = vpop.f32.mrf.mxu1  ;;  %v226_v40 = vadd.f32 %v450_v32, %v316_v14 }
  0xdd   :  { %373 = vst [vmem:[%s566_s3] sm:$0xff] %v372_v33   ;;  %412 = vst [vmem:[%s566_s3 + $0x20] sm:$0xff] %v392_v34   ;;  %v186_v43 = vadd.f32 %v316_v14, %v185_v35  ;;  %v218_v44 = vadd.f32 %v316_v14, %v217_v36 }
  0xde   :  { %v443_v37 = vpop.f32.mrf.mxu0  ;;  %v451_v38 = vpop.f32.mrf.mxu1 }
  0xdf   :  { %v197_v41 = vadd.f32 %v443_v37, %v316_v14  ;;  %v229_v42 = vadd.f32 %v451_v38, %v316_v14 }
  0xe0   :  { %v188_v45 = vpop.f32.mrf.mxu0  ;;  %v220_v46 = vpop.f32.mrf.mxu1 }
  0xe1   :  { %v387_v47 = vpack.c.bf16 %v197_v41, %v194_v39  ;;  %v407_v48 = vpack.c.bf16 %v229_v42, %v226_v40  ;;  %v189_v49 = vadd.f32 %v316_v14, %v188_v45  ;;  %v221_v50 = vadd.f32 %v316_v14, %v220_v46 }
  0xe3   :  { %411 = vst [vmem:[%s566_s3 + $0x18] sm:$0xff] %v387_v47   ;;  %415 = vst [vmem:[%s566_s3 + $0x38] sm:$0xff] %v407_v48   ;;  %v382_v51 = vpack.c.bf16 %v189_v49, %v186_v43  ;;  %v402_v52 = vpack.c.bf16 %v221_v50, %v218_v44 }
  0xe5   :  { %410 = vst [vmem:[%s566_s3 + $0x10] sm:$0xff] %v382_v51   ;;  %414 = vst [vmem:[%s566_s3 + $0x30] sm:$0xff] %v402_v52  }

// kernel: vqvae_forward.8
= control target key start
LH: loop header
LB: loop body
LE: loop exit
PB: predicated region body
PF: predicated region fallthrough
CT: control target
= control target key end

     0   :  { %s2702_s1 = inlined_call_operand.vmem [shape: bf16[2048,128], index: 1, kind: input, shape index: {}]   ;;  %s2703_s0 = inlined_call_operand.vmem [shape: bf16[32,2048], index: 0, kind: input, shape index: {}]   ;;  %s2704_s2 = inlined_call_operand.vmem [shape: f32[1,128], index: 2, kind: input, shape index: {}]   ;;  %s2705_s3 = inlined_call_operand.vmem [shape: bf16[32,128], index: 3, kind: output, shape index: {}]  }
   0x1   :  { %v2062_v0 = vld [vmem:[%s2702_s1 + $0x78] sm:$0xff]   ;;  %v2066_v4 = vld [vmem:[%s2702_s1 + $0x70] sm:$0xff]   ;;  %v2070_v8 = vld [vmem:[%s2702_s1 + $0x68] sm:$0xff]  }
   0x2   :  { %v2063_v1 = vld [vmem:[%s2702_s1 + $0xf8] sm:$0xff]   ;;  %1838 = vmatprep.subr.bf16.mxu0 %v2062_v0  ;;  %v2067_v5 = vld [vmem:[%s2702_s1 + $0xf0] sm:$0xff]   ;;  %v2071_v9 = vld [vmem:[%s2702_s1 + $0xe8] sm:$0xff]  }
   0x3   :  { %v2064_v2 = vld [vmem:[%s2702_s1 + $0x38] sm:$0xff]   ;;  %1866 = vmatprep.subr.bf16.mxu1 %v2063_v1  ;;  %v2068_v6 = vld [vmem:[%s2702_s1 + $0x30] sm:$0xff]   ;;  %v2072_v10 = vld [vmem:[%s2702_s1 + $0x28] sm:$0xff]  }
   0x4   :  { %v2065_v3 = vld [vmem:[%s2702_s1 + $0xb8] sm:$0xff]   ;;  %1839 = vmatpush3.bf16.msra.mxu0 %v2064_v2  ;;  %v2069_v7 = vld [vmem:[%s2702_s1 + $0xb0] sm:$0xff]   ;;  %v2073_v11 = vld [vmem:[%s2702_s1 + $0xa8] sm:$0xff]  }
   0x5   :  { %1867 = vmatpush3.bf16.msra.mxu1 %v2065_v3  ;;  %1840 = vmatprep.subr.bf16.mxu0 %v2066_v4  ;;  %v2074_v12 = vld [vmem:[%s2702_s1 + $0x60] sm:$0xff]   ;;  %v2078_v16 = vld [vmem:[%s2702_s1 + $0x58] sm:$0xff]   ;;  %v2082_v20 = vld [vmem:[%s2702_s1 + $0x50] sm:$0xff]  }
   0x6   :  { %1868 = vmatprep.subr.bf16.mxu1 %v2067_v5  ;;  %v2075_v13 = vld [vmem:[%s2702_s1 + $0xe0] sm:$0xff]   ;;  %v2079_v17 = vld [vmem:[%s2702_s1 + $0xd8] sm:$0xff]   ;;  %v2083_v21 = vld [vmem:[%s2702_s1 + $0xd0] sm:$0xff]  }
   0x7   :  { %v2076_v14 = vld [vmem:[%s2702_s1 + $0x20] sm:$0xff]   ;;  %v2080_v18 = vld [vmem:[%s2702_s1 + $0x18] sm:$0xff]   ;;  %v2084_v22 = vld [vmem:[%s2702_s1 + $0x10] sm:$0xff]  }
   0x8   :  { %1841 = vmatpush3.bf16.msra.mxu0 %v2068_v6  ;;  %v2077_v15 = vld [vmem:[%s2702_s1 + $0xa0] sm:$0xff]   ;;  %v2081_v19 = vld [vmem:[%s2702_s1 + $0x98] sm:$0xff]   ;;  %v2085_v23 = vld [vmem:[%s2702_s1 + $0x90] sm:$0xff]  }
   0x9   :  { %1869 = vmatpush3.bf16.msra.mxu1 %v2069_v7  ;;  %1842 = vmatprep.subr.bf16.mxu0 %v2070_v8  ;;  %v2086_v24 = vld [vmem:[%s2702_s1 + $0x48] sm:$0xff]   ;;  %v2090_v28 = vld [vmem:[%s2702_s1 + $0x40] sm:$0xff]   ;;  %v2094_v40 = vld [vmem:[%s2702_s1 + $0x178] sm:$0xff]  }
   0xa   :  { %1870 = vmatprep.subr.bf16.mxu1 %v2071_v9  ;;  %v2087_v25 = vld [vmem:[%s2702_s1 + $0xc8] sm:$0xff]   ;;  %v2091_v29 = vld [vmem:[%s2702_s1 + $0xc0] sm:$0xff]   ;;  %v2095_v41 = vld [vmem:[%s2702_s1 + $0x1f8] sm:$0xff]  }
   0xb   :  { %v2088_v26 = vld [vmem:[%s2702_s1 + $0x8] sm:$0xff]   ;;  %v2092_v30 = vld [vmem:[%s2702_s1] sm:$0xff]   ;;  %v2096_v42 = vld [vmem:[%s2702_s1 + $0x138] sm:$0xff]  }
   0xc   :  { %1843 = vmatpush3.bf16.msra.mxu0 %v2072_v10  ;;  %v2089_v27 = vld [vmem:[%s2702_s1 + $0x88] sm:$0xff]   ;;  %v2093_v31 = vld [vmem:[%s2702_s1 + $0x80] sm:$0xff]   ;;  %v2097_v43 = vld [vmem:[%s2702_s1 + $0x1b8] sm:$0xff]  }
   0xd   :  { %1871 = vmatpush3.bf16.msra.mxu1 %v2073_v11  ;;  %1844 = vmatprep.subr.bf16.mxu0 %v2074_v12  ;;  %v15_v32 = vld [vmem:[%s2703_s0] sm:$0xff]  ;;  %v16_v34 = vld [vmem:[%s2703_s0 + $0x8] sm:$0xff]  ;;  %v2098_v44 = vld [vmem:[%s2702_s1 + $0x170] sm:$0xff]  }
   0xe   :  { %1872 = vmatprep.subr.bf16.mxu1 %v2075_v13  ;;  %v23_v33 = vld [vmem:[%s2703_s0 + $0x40] sm:$0xff]  ;;  %v24_v37 = vld [vmem:[%s2703_s0 + $0x48] sm:$0xff]  ;;  %v2099_v45 = vld [vmem:[%s2702_s1 + $0x1f0] sm:$0xff]  }
   0xf   :  { %v1659_v35 = vcombine.low %v15_v32, %v23_v33  ;;  %v1660_v36 = vcombine.high %v15_v32, %v23_v33  ;;  %v1661_v38 = vcombine.low %v16_v34, %v24_v37  ;;  %v1662_v39 = vcombine.high %v16_v34, %v24_v37  ;;  %v2100_v46 = vld [vmem:[%s2702_s1 + $0x130] sm:$0xff]   ;;  %v2102_v48 = vld [vmem:[%s2702_s1 + $0x168] sm:$0xff]   ;;  %v2106_v52 = vld [vmem:[%s2702_s1 + $0x160] sm:$0xff]  }
  0x10   :  { %1845 = vmatpush3.bf16.msra.mxu0 %v2076_v14  ;;  %v2101_v47 = vld [vmem:[%s2702_s1 + $0x1b0] sm:$0xff]   ;;  %v2103_v49 = vld [vmem:[%s2702_s1 + $0x1e8] sm:$0xff]   ;;  %v2107_v53 = vld [vmem:[%s2702_s1 + $0x1e0] sm:$0xff]  }
  0x11   :  { %1873 = vmatpush3.bf16.msra.mxu1 %v2077_v15  ;;  %1846 = vmatprep.subr.bf16.mxu0 %v2078_v16  ;;  %v2104_v50 = vld [vmem:[%s2702_s1 + $0x128] sm:$0xff]   ;;  %v2108_v54 = vld [vmem:[%s2702_s1 + $0x120] sm:$0xff]   ;;  %v2110_v56 = vld [vmem:[%s2702_s1 + $0x158] sm:$0xff]  }
  0x12   :  { %1874 = vmatprep.subr.bf16.mxu1 %v2079_v17  ;;  %1270 = vmatprep.mubr.bf16.mxu0 %v1660_v36  ;;  %v2105_v51 = vld [vmem:[%s2702_s1 + $0x1a8] sm:$0xff]   ;;  %v2109_v55 = vld [vmem:[%s2702_s1 + $0x1a0] sm:$0xff]   ;;  %v2111_v57 = vld [vmem:[%s2702_s1 + $0x1d8] sm:$0xff]  }
  0x13   :  { %1319 = vmatprep.mubr.bf16.mxu1 %v1662_v39  ;;  %v2112_v58 = vld [vmem:[%s2702_s1 + $0x118] sm:$0xff]   ;;  %v31_v60 = vld [vmem:[%s2703_s0 + $0x80] sm:$0xff]  ;;  %v32_v0 = vld [vmem:[%s2703_s0 + $0x88] sm:$0xff] }
  0x14   :  { %1847 = vmatpush3.bf16.msra.mxu0 %v2080_v18  ;;  %v2113_v59 = vld [vmem:[%s2702_s1 + $0x198] sm:$0xff]   ;;  %v39_v61 = vld [vmem:[%s2703_s0 + $0xc0] sm:$0xff]  ;;  %v40_v1 = vld [vmem:[%s2703_s0 + $0xc8] sm:$0xff] }
  0x15   :  { %1875 = vmatpush3.bf16.msra.mxu1 %v2081_v19  ;;  %1848 = vmatprep.subr.bf16.mxu0 %v2082_v20  ;;  %v1676_v62 = vcombine.high %v31_v60, %v39_v61  ;;  %v1675_v63 = vcombine.low %v31_v60, %v39_v61  ;;  %v1678_v2 = vcombine.high %v32_v0, %v40_v1  ;;  %v2114_v3 = vld [vmem:[%s2702_s1 + $0x150] sm:$0xff]   ;;  %v2118_v8 = vld [vmem:[%s2702_s1 + $0x148] sm:$0xff]   ;;  %v2122_v12 = vld [vmem:[%s2702_s1 + $0x140] sm:$0xff]  }
  0x16   :  { %1876 = vmatprep.subr.bf16.mxu1 %v2083_v21  ;;  %v1677_v4 = vcombine.low %v32_v0, %v40_v1  ;;  %v2115_v5 = vld [vmem:[%s2702_s1 + $0x1d0] sm:$0xff]   ;;  %v2119_v9 = vld [vmem:[%s2702_s1 + $0x1c8] sm:$0xff]   ;;  %v2123_v13 = vld [vmem:[%s2702_s1 + $0x1c0] sm:$0xff]  }
  0x17   :  { %v2116_v6 = vld [vmem:[%s2702_s1 + $0x110] sm:$0xff]   ;;  %v2120_v10 = vld [vmem:[%s2702_s1 + $0x108] sm:$0xff]   ;;  %v2124_v14 = vld [vmem:[%s2702_s1 + $0x100] sm:$0xff]  }
  0x18   :  { %1849 = vmatpush3.bf16.msra.mxu0 %v2084_v22  ;;  %v2117_v7 = vld [vmem:[%s2702_s1 + $0x190] sm:$0xff]   ;;  %v2121_v11 = vld [vmem:[%s2702_s1 + $0x188] sm:$0xff]   ;;  %v2125_v15 = vld [vmem:[%s2702_s1 + $0x180] sm:$0xff]  }
  0x19   :  { %1877 = vmatpush3.bf16.msra.mxu1 %v2085_v23  ;;  %1850 = vmatprep.subr.bf16.mxu0 %v2086_v24  ;;  %v17_v16 = vld [vmem:[%s2703_s0 + $0x10] sm:$0xff]  ;;  %v18_v18 = vld [vmem:[%s2703_s0 + $0x18] sm:$0xff]  ;;  %v2134_v36 = vld [vmem:[%s2702_s1 + $0x268] sm:$0xff]  }
  0x1a   :  { %1878 = vmatprep.subr.bf16.mxu1 %v2087_v25  ;;  %v25_v17 = vld [vmem:[%s2703_s0 + $0x50] sm:$0xff]  ;;  %v26_v19 = vld [vmem:[%s2703_s0 + $0x58] sm:$0xff]  ;;  %v2135_v37 = vld [vmem:[%s2702_s1 + $0x2e8] sm:$0xff]  }
  0x1b   :  { %v1663_v20 = vcombine.low %v17_v16, %v25_v17  ;;  %v1664_v21 = vcombine.high %v17_v16, %v25_v17  ;;  %v1665_v22 = vcombine.low %v18_v18, %v26_v19  ;;  %v1666_v23 = vcombine.high %v18_v18, %v26_v19  ;;  %v2126_v24 = vld [vmem:[%s2702_s1 + $0x278] sm:$0xff]   ;;  %v33_v32 = vld [vmem:[%s2703_s0 + $0x90] sm:$0xff]  ;;  %v2154_v60 = vld [vmem:[%s2702_s1 + $0x240] sm:$0xff]  }
  0x1c   :  { %1851 = vmatpush3.bf16.msra.mxu0 %v2088_v26  ;;  %v2127_v25 = vld [vmem:[%s2702_s1 + $0x2f8] sm:$0xff]   ;;  %v41_v33 = vld [vmem:[%s2703_s0 + $0xd0] sm:$0xff]  ;;  %v2155_v61 = vld [vmem:[%s2702_s1 + $0x2c0] sm:$0xff]  }
  0x1d   :  { %1879 = vmatpush3.bf16.msra.mxu1 %v2089_v27  ;;  %1852 = vmatprep.subr.bf16.mxu0 %v2090_v28  ;;  %v2128_v26 = vld [vmem:[%s2702_s1 + $0x238] sm:$0xff]   ;;  %v2130_v28 = vld [vmem:[%s2702_s1 + $0x270] sm:$0xff]   ;;  %v1680_v34 = vcombine.high %v33_v32, %v41_v33  ;;  %v19_v0 = vld [vmem:[%s2703_s0 + $0x20] sm:$0xff] }
  0x1e   :  { %1880 = vmatprep.subr.bf16.mxu1 %v2091_v29  ;;  %v2129_v27 = vld [vmem:[%s2702_s1 + $0x2b8] sm:$0xff]   ;;  %v2131_v29 = vld [vmem:[%s2702_s1 + $0x2f0] sm:$0xff]   ;;  %v27_v1 = vld [vmem:[%s2703_s0 + $0x60] sm:$0xff] }
  0x1f   :  { %v42_v39 = vld [vmem:[%s2703_s0 + $0xd8] sm:$0xff]  ;;  %v35_v16 = vld [vmem:[%s2703_s0 + $0xa0] sm:$0xff] }
  0x20   :  { %1853 = vmatpush3.bf16.msra.mxu0 %v2092_v30  ;;  %v2132_v30 = vld [vmem:[%s2702_s1 + $0x230] sm:$0xff]   ;;  %v43_v17 = vld [vmem:[%s2703_s0 + $0xe0] sm:$0xff] }
  0x21   :  { %1881 = vmatpush3.bf16.msra.mxu1 %v2093_v31  ;;  %1894 = vmatprep.subr.bf16.mxu0 %v2094_v40  ;;  %v2133_v31 = vld [vmem:[%s2702_s1 + $0x2b0] sm:$0xff]   ;;  %v1684_v18 = vcombine.high %v35_v16, %v43_v17  ;;  %v1683_v19 = vcombine.low %v35_v16, %v43_v17 }
  0x22   :  { %1922 = vmatprep.subr.bf16.mxu1 %v2095_v41  ;;  %v2136_v41 = vld [vmem:[%s2702_s1 + $0x228] sm:$0xff]  }
  0x23   :  { %1271 = vmatmul.mubr.bf16.vlgmr.msra.gmra.mxu0 %v1659_v35  ;;  %v1679_v35 = vcombine.low %v33_v32, %v41_v33  ;;  %v2174_v32 = vld [vmem:[%s2702_s1 + $0x358] sm:$0xff]  }
  0x24   :  { %1320 = vmatmul.mubr.bf16.vlgmr.msra.gmra.mxu1 %v1661_v38  ;;  %1895 = vmatpush3.bf16.msra.mxu0 %v2096_v42  ;;  %v34_v38 = vld [vmem:[%s2703_s0 + $0x98] sm:$0xff] }
  0x25   :  { %1923 = vmatpush3.bf16.msra.mxu1 %v2097_v43  ;;  %1896 = vmatprep.subr.bf16.mxu0 %v2098_v44  ;;  %v1682_v40 = vcombine.high %v34_v38, %v42_v39  ;;  %v1681_v42 = vcombine.low %v34_v38, %v42_v39  ;;  %v2137_v43 = vld [vmem:[%s2702_s1 + $0x2a8] sm:$0xff]   ;;  %v2138_v44 = vld [vmem:[%s2702_s1 + $0x260] sm:$0xff]   ;;  %v2175_v33 = vld [vmem:[%s2702_s1 + $0x3d8] sm:$0xff]  }
  0x26   :  { %1924 = vmatprep.subr.bf16.mxu1 %v2099_v45  ;;  %1278 = vmatprep.mubr.bf16.mxu0 %v1676_v62  ;;  %v2139_v45 = vld [vmem:[%s2702_s1 + $0x2e0] sm:$0xff]   ;;  %v2180_v38 = vld [vmem:[%s2702_s1 + $0x310] sm:$0xff]  }
  0x27   :  { %1327 = vmatprep.mubr.bf16.mxu1 %v1678_v2  ;;  %v2156_v62 = vld [vmem:[%s2702_s1 + $0x200] sm:$0xff]   ;;  %v1667_v2 = vcombine.low %v19_v0, %v27_v1  ;;  %v2181_v39 = vld [vmem:[%s2702_s1 + $0x390] sm:$0xff]  }
  0x28   :  { %1897 = vmatpush3.bf16.msra.mxu0 %v2100_v46  ;;  %v2140_v46 = vld [vmem:[%s2702_s1 + $0x220] sm:$0xff]  }
  0x29   :  { %1925 = vmatpush3.bf16.msra.mxu1 %v2101_v47  ;;  %1898 = vmatprep.subr.bf16.mxu0 %v2102_v48  ;;  %v2141_v47 = vld [vmem:[%s2702_s1 + $0x2a0] sm:$0xff]   ;;  %v2142_v48 = vld [vmem:[%s2702_s1 + $0x258] sm:$0xff]  }
  0x2a   :  { %1926 = vmatprep.subr.bf16.mxu1 %v2103_v49  ;;  %v2143_v49 = vld [vmem:[%s2702_s1 + $0x2d8] sm:$0xff]  }
  0x2b   :  { %1279 = vmatmul.mubr.bf16.gmra.mxu0 %v1675_v63  ;;  %v2157_v63 = vld [vmem:[%s2702_s1 + $0x280] sm:$0xff]  }
  0x2c   :  { %1899 = vmatpush3.bf16.msra.mxu0 %v2104_v50  ;;  %1328 = vmatmul.mubr.bf16.gmra.mxu1 %v1677_v4  ;;  %v2144_v50 = vld [vmem:[%s2702_s1 + $0x218] sm:$0xff]   ;;  %v20_v4 = vld [vmem:[%s2703_s0 + $0x28] sm:$0xff] }
  0x2d   :  { %1927 = vmatpush3.bf16.msra.mxu1 %v2105_v51  ;;  %1900 = vmatprep.subr.bf16.mxu0 %v2106_v52  ;;  %v2145_v51 = vld [vmem:[%s2702_s1 + $0x298] sm:$0xff]   ;;  %v2146_v52 = vld [vmem:[%s2702_s1 + $0x250] sm:$0xff]  }
  0x2e   :  { %1928 = vmatprep.subr.bf16.mxu1 %v2107_v53  ;;  %1368 = vmatprep.mubr.bf16.mxu0 %v1664_v21  ;;  %v2147_v53 = vld [vmem:[%s2702_s1 + $0x2d0] sm:$0xff]   ;;  %v2167_v21 = vld [vmem:[%s2702_s1 + $0x3e8] sm:$0xff]  }
  0x2f   :  { %1417 = vmatprep.mubr.bf16.mxu1 %v1666_v23  ;;  %v44_v23 = vld [vmem:[%s2703_s0 + $0xe8] sm:$0xff] }
  0x30   :  { %1901 = vmatpush3.bf16.msra.mxu0 %v2108_v54  ;;  %v2148_v54 = vld [vmem:[%s2702_s1 + $0x210] sm:$0xff]  }
  0x31   :  { %1929 = vmatpush3.bf16.msra.mxu1 %v2109_v55  ;;  %1902 = vmatprep.subr.bf16.mxu0 %v2110_v56  ;;  %v2149_v55 = vld [vmem:[%s2702_s1 + $0x290] sm:$0xff]   ;;  %v2150_v56 = vld [vmem:[%s2702_s1 + $0x248] sm:$0xff]  }
  0x32   :  { %1930 = vmatprep.subr.bf16.mxu1 %v2111_v57  ;;  %v2151_v57 = vld [vmem:[%s2702_s1 + $0x2c8] sm:$0xff]  }
  0x34   :  { %1903 = vmatpush3.bf16.msra.mxu0 %v2112_v58  ;;  %v2152_v58 = vld [vmem:[%s2702_s1 + $0x208] sm:$0xff]  }
  0x35   :  { %1931 = vmatpush3.bf16.msra.mxu1 %v2113_v59  ;;  %1904 = vmatprep.subr.bf16.mxu0 %v2114_v3  ;;  %v2153_v59 = vld [vmem:[%s2702_s1 + $0x288] sm:$0xff]   ;;  %v1668_v3 = vcombine.high %v19_v0, %v27_v1 }
  0x36   :  { %1932 = vmatprep.subr.bf16.mxu1 %v2115_v5  ;;  %v28_v5 = vld [vmem:[%s2703_s0 + $0x68] sm:$0xff] }
  0x38   :  { %1905 = vmatpush3.bf16.msra.mxu0 %v2116_v6  ;;  %v1669_v6 = vcombine.low %v20_v4, %v28_v5 }
  0x39   :  { %1933 = vmatpush3.bf16.msra.mxu1 %v2117_v7  ;;  %1906 = vmatprep.subr.bf16.mxu0 %v2118_v8  ;;  %v1670_v7 = vcombine.high %v20_v4, %v28_v5  ;;  %v2158_v8 = vld [vmem:[%s2702_s1 + $0x378] sm:$0xff]  }
  0x3a   :  { %1934 = vmatprep.subr.bf16.mxu1 %v2119_v9  ;;  %v2159_v9 = vld [vmem:[%s2702_s1 + $0x3f8] sm:$0xff]  }
  0x3c   :  { %1907 = vmatpush3.bf16.msra.mxu0 %v2120_v10  ;;  %v2160_v10 = vld [vmem:[%s2702_s1 + $0x338] sm:$0xff]  }
  0x3d   :  { %1935 = vmatpush3.bf16.msra.mxu1 %v2121_v11  ;;  %1908 = vmatprep.subr.bf16.mxu0 %v2122_v12  ;;  %v2161_v11 = vld [vmem:[%s2702_s1 + $0x3b8] sm:$0xff]   ;;  %v2162_v12 = vld [vmem:[%s2702_s1 + $0x370] sm:$0xff]  }
  0x3e   :  { %1936 = vmatprep.subr.bf16.mxu1 %v2123_v13  ;;  %v2163_v13 = vld [vmem:[%s2702_s1 + $0x3f0] sm:$0xff]  }
  0x40   :  { %1909 = vmatpush3.bf16.msra.mxu0 %v2124_v14  ;;  %v2164_v14 = vld [vmem:[%s2702_s1 + $0x330] sm:$0xff]  }
  0x41   :  { %1937 = vmatpush3.bf16.msra.mxu1 %v2125_v15  ;;  %1950 = vmatprep.subr.bf16.mxu0 %v2126_v24  ;;  %v2165_v15 = vld [vmem:[%s2702_s1 + $0x3b0] sm:$0xff]  }
  0x42   :  { %1978 = vmatprep.subr.bf16.mxu1 %v2127_v25  ;;  %v2168_v25 = vld [vmem:[%s2702_s1 + $0x328] sm:$0xff]  }
  0x43   :  { %1369 = vmatmul.mubr.bf16.vlgmr.msra.gmra.mxu0 %v1663_v20  ;;  %v2166_v20 = vld [vmem:[%s2702_s1 + $0x368] sm:$0xff]  }
  0x44   :  { %1418 = vmatmul.mubr.bf16.vlgmr.msra.gmra.mxu1 %v1665_v22  ;;  %1951 = vmatpush3.bf16.msra.mxu0 %v2128_v26  ;;  %v36_v22 = vld [vmem:[%s2703_s0 + $0xa8] sm:$0xff] }
  0x45   :  { %1979 = vmatpush3.bf16.msra.mxu1 %v2129_v27  ;;  %1952 = vmatprep.subr.bf16.mxu0 %v2130_v28  ;;  %v1686_v24 = vcombine.high %v36_v22, %v44_v23  ;;  %v1685_v26 = vcombine.low %v36_v22, %v44_v23  ;;  %v2169_v27 = vld [vmem:[%s2702_s1 + $0x3a8] sm:$0xff]   ;;  %v2170_v28 = vld [vmem:[%s2702_s1 + $0x360] sm:$0xff]  }
  0x46   :  { %1980 = vmatprep.subr.bf16.mxu1 %v2131_v29  ;;  %1376 = vmatprep.mubr.bf16.mxu0 %v1680_v34  ;;  %v2171_v29 = vld [vmem:[%s2702_s1 + $0x3e0] sm:$0xff]   ;;  %v2176_v34 = vld [vmem:[%s2702_s1 + $0x318] sm:$0xff]  }
  0x47   :  { %1425 = vmatprep.mubr.bf16.mxu1 %v1682_v40  ;;  %v2182_v40 = vld [vmem:[%s2702_s1 + $0x348] sm:$0xff]  }
  0x48   :  { %1953 = vmatpush3.bf16.msra.mxu0 %v2132_v30  ;;  %v2172_v30 = vld [vmem:[%s2702_s1 + $0x320] sm:$0xff]  }
  0x49   :  { %1981 = vmatpush3.bf16.msra.mxu1 %v2133_v31  ;;  %1954 = vmatprep.subr.bf16.mxu0 %v2134_v36  ;;  %v2173_v31 = vld [vmem:[%s2702_s1 + $0x3a0] sm:$0xff]   ;;  %v2178_v36 = vld [vmem:[%s2702_s1 + $0x350] sm:$0xff]  }
  0x4a   :  { %1982 = vmatprep.subr.bf16.mxu1 %v2135_v37  ;;  %v2179_v37 = vld [vmem:[%s2702_s1 + $0x3d0] sm:$0xff]  }
  0x4b   :  { %1377 = vmatmul.mubr.bf16.gmra.mxu0 %v1679_v35  ;;  %v2177_v35 = vld [vmem:[%s2702_s1 + $0x398] sm:$0xff]  }
  0x4c   :  { %1955 = vmatpush3.bf16.msra.mxu0 %v2136_v41  ;;  %1426 = vmatmul.mubr.bf16.gmra.mxu1 %v1681_v42  ;;  %v2183_v41 = vld [vmem:[%s2702_s1 + $0x3c8] sm:$0xff]  }
  0x4d   :  { %1983 = vmatpush3.bf16.msra.mxu1 %v2137_v43  ;;  %1956 = vmatprep.subr.bf16.mxu0 %v2138_v44  ;;  %v2184_v42 = vld [vmem:[%s2702_s1 + $0x308] sm:$0xff]   ;;  %v2186_v44 = vld [vmem:[%s2702_s1 + $0x340] sm:$0xff]  }
  0x4e   :  { %1984 = vmatprep.subr.bf16.mxu1 %v2139_v45  ;;  %1466 = vmatprep.mubr.bf16.mxu0 %v1668_v3  ;;  %v2185_v43 = vld [vmem:[%s2702_s1 + $0x388] sm:$0xff]   ;;  %v2187_v45 = vld [vmem:[%s2702_s1 + $0x3c0] sm:$0xff]  }
  0x4f   :  { %1515 = vmatprep.mubr.bf16.mxu1 %v1670_v7 }
  0x50   :  { %1957 = vmatpush3.bf16.msra.mxu0 %v2140_v46  ;;  %v2188_v46 = vld [vmem:[%s2702_s1 + $0x300] sm:$0xff]  }
  0x51   :  { %1985 = vmatpush3.bf16.msra.mxu1 %v2141_v47  ;;  %1958 = vmatprep.subr.bf16.mxu0 %v2142_v48  ;;  %v2189_v47 = vld [vmem:[%s2702_s1 + $0x380] sm:$0xff]   ;;  %v21_v48 = vld [vmem:[%s2703_s0 + $0x30] sm:$0xff] }
  0x52   :  { %1986 = vmatprep.subr.bf16.mxu1 %v2143_v49  ;;  %v29_v49 = vld [vmem:[%s2703_s0 + $0x70] sm:$0xff] }
  0x54   :  { %1959 = vmatpush3.bf16.msra.mxu0 %v2144_v50  ;;  %v22_v50 = vld [vmem:[%s2703_s0 + $0x38] sm:$0xff] }
  0x55   :  { %1987 = vmatpush3.bf16.msra.mxu1 %v2145_v51  ;;  %1960 = vmatprep.subr.bf16.mxu0 %v2146_v52  ;;  %v1671_v51 = vcombine.low %v21_v48, %v29_v49  ;;  %v1672_v52 = vcombine.high %v21_v48, %v29_v49 }
  0x56   :  { %1988 = vmatprep.subr.bf16.mxu1 %v2147_v53  ;;  %v30_v53 = vld [vmem:[%s2703_s0 + $0x78] sm:$0xff] }
  0x58   :  { %1961 = vmatpush3.bf16.msra.mxu0 %v2148_v54  ;;  %v37_v54 = vld [vmem:[%s2703_s0 + $0xb0] sm:$0xff] }
  0x59   :  { %1989 = vmatpush3.bf16.msra.mxu1 %v2149_v55  ;;  %1962 = vmatprep.subr.bf16.mxu0 %v2150_v56  ;;  %v45_v55 = vld [vmem:[%s2703_s0 + $0xf0] sm:$0xff]  ;;  %v1673_v56 = vcombine.low %v22_v50, %v30_v53 }
  0x5a   :  { %1990 = vmatprep.subr.bf16.mxu1 %v2151_v57  ;;  %v1674_v57 = vcombine.high %v22_v50, %v30_v53 }
  0x5c   :  { %1963 = vmatpush3.bf16.msra.mxu0 %v2152_v58  ;;  %v1688_v58 = vcombine.high %v37_v54, %v45_v55 }
  0x5d   :  { %1991 = vmatpush3.bf16.msra.mxu1 %v2153_v59  ;;  %1964 = vmatprep.subr.bf16.mxu0 %v2154_v60  ;;  %v38_v59 = vld [vmem:[%s2703_s0 + $0xb8] sm:$0xff] }
  0x5e   :  { %1992 = vmatprep.subr.bf16.mxu1 %v2155_v61  ;;  %v46_v60 = vld [vmem:[%s2703_s0 + $0xf8] sm:$0xff] }
  0x5f   :  { %v1690_v61 = vcombine.high %v38_v59, %v46_v60 }
  0x60   :  { %1965 = vmatpush3.bf16.msra.mxu0 %v2156_v62  ;;  %v1687_v62 = vcombine.low %v37_v54, %v45_v55 }
  0x61   :  { %1993 = vmatpush3.bf16.msra.mxu1 %v2157_v63  ;;  %2006 = vmatprep.subr.bf16.mxu0 %v2158_v8  ;;  %v1689_v63 = vcombine.low %v38_v59, %v46_v60 }
  0x62   :  { %2034 = vmatprep.subr.bf16.mxu1 %v2159_v9 }
  0x63   :  { %1467 = vmatmul.mubr.bf16.vlgmr.msra.gmra.mxu0 %v1667_v2 }
  0x64   :  { %1516 = vmatmul.mubr.bf16.vlgmr.msra.gmra.mxu1 %v1669_v6  ;;  %2007 = vmatpush3.bf16.msra.mxu0 %v2160_v10 }
  0x65   :  { %2035 = vmatpush3.bf16.msra.mxu1 %v2161_v11  ;;  %2008 = vmatprep.subr.bf16.mxu0 %v2162_v12 }
  0x66   :  { %2036 = vmatprep.subr.bf16.mxu1 %v2163_v13  ;;  %1474 = vmatprep.mubr.bf16.mxu0 %v1684_v18 }
  0x67   :  { %1523 = vmatprep.mubr.bf16.mxu1 %v1686_v24 }
  0x68   :  { %2009 = vmatpush3.bf16.msra.mxu0 %v2164_v14 }
  0x69   :  { %2037 = vmatpush3.bf16.msra.mxu1 %v2165_v15  ;;  %2010 = vmatprep.subr.bf16.mxu0 %v2166_v20 }
  0x6a   :  { %2038 = vmatprep.subr.bf16.mxu1 %v2167_v21 }
  0x6b   :  { %1475 = vmatmul.mubr.bf16.gmra.mxu0 %v1683_v19 }
  0x6c   :  { %2011 = vmatpush3.bf16.msra.mxu0 %v2168_v25  ;;  %1524 = vmatmul.mubr.bf16.gmra.mxu1 %v1685_v26 }
  0x6d   :  { %2039 = vmatpush3.bf16.msra.mxu1 %v2169_v27  ;;  %2012 = vmatprep.subr.bf16.mxu0 %v2170_v28 }
  0x6e   :  { %2040 = vmatprep.subr.bf16.mxu1 %v2171_v29  ;;  %1564 = vmatprep.mubr.bf16.mxu0 %v1672_v52 }
  0x6f   :  { %1613 = vmatprep.mubr.bf16.mxu1 %v1674_v57 }
  0x70   :  { %2013 = vmatpush3.bf16.msra.mxu0 %v2172_v30 }
  0x71   :  { %2041 = vmatpush3.bf16.msra.mxu1 %v2173_v31  ;;  %2014 = vmatprep.subr.bf16.mxu0 %v2174_v32 }
  0x72   :  { %2042 = vmatprep.subr.bf16.mxu1 %v2175_v33 }
  0x74   :  { %2015 = vmatpush3.bf16.msra.mxu0 %v2176_v34 }
  0x75   :  { %2043 = vmatpush3.bf16.msra.mxu1 %v2177_v35  ;;  %2016 = vmatprep.subr.bf16.mxu0 %v2178_v36 }
  0x76   :  { %2044 = vmatprep.subr.bf16.mxu1 %v2179_v37 }
  0x78   :  { %2017 = vmatpush3.bf16.msra.mxu0 %v2180_v38 }
  0x79   :  { %2045 = vmatpush3.bf16.msra.mxu1 %v2181_v39  ;;  %2018 = vmatprep.subr.bf16.mxu0 %v2182_v40  ;;  %v1658_v40 = vld [vmem:[%s2704_s2] ss:$0 sm:$0xff] }
  0x7a   :  { %2046 = vmatprep.subr.bf16.mxu1 %v2183_v41 }
  0x7c   :  { %2019 = vmatpush3.bf16.msra.mxu0 %v2184_v42 }
  0x7d   :  { %2047 = vmatpush3.bf16.msra.mxu1 %v2185_v43  ;;  %2020 = vmatprep.subr.bf16.mxu0 %v2186_v44 }
  0x7e   :  { %2048 = vmatprep.subr.bf16.mxu1 %v2187_v45 }
  0x80   :  { %2021 = vmatpush3.bf16.msra.mxu0 %v2188_v46 }
  0x81   :  { %2049 = vmatpush3.bf16.msra.mxu1 %v2189_v47 }
  0x83   :  { %1565 = vmatmul.mubr.bf16.vlgmr.msra.gmra.mxu0 %v1671_v51 }
  0x84   :  { %1614 = vmatmul.mubr.bf16.vlgmr.msra.gmra.mxu1 %v1673_v56  ;;  %1572 = vmatprep.mubr.bf16.mxu0 %v1688_v58 }
  0x85   :  { %1621 = vmatprep.mubr.bf16.mxu1 %v1690_v61 }
  0x8b   :  { %1573 = vmatmul.mubr.bf16.gmra.mxu0 %v1687_v62 }
  0x8c   :  { %1622 = vmatmul.mubr.bf16.gmra.mxu1 %v1689_v63 }
  0xe3   :  { %v1854_v0 = vpop.f32.mrf.mxu0 }
  0xe4   :  { %v1882_v2 = vpop.f32.mrf.mxu1 }
  0xe5   :  { %v1855_v1 = vpop.f32.mrf.mxu0 }
  0xe6   :  { %v1883_v4 = vpop.f32.mrf.mxu1  ;;  %v1856_v39 = vadd.f32 %v1855_v1, %v1854_v0 }
  0xe7   :  { %v1857_v3 = vpop.f32.mrf.mxu0  ;;  %v1884_v44 = vadd.f32 %v1883_v4, %v1882_v2 }
  0xe8   :  { %v1885_v6 = vpop.f32.mrf.mxu1  ;;  %v1273_v43 = vadd.f32 %v1856_v39, %v1658_v40 }
  0xe9   :  { %v1858_v5 = vpop.f32.mrf.mxu0 }
  0xea   :  { %v1886_v8 = vpop.f32.mrf.mxu1  ;;  %v1859_v45 = vadd.f32 %v1858_v5, %v1857_v3  ;;  %v1322_v50 = vadd.f32 %v1884_v44, %v1273_v43 }
  0xeb   :  { %v1860_v7 = vpop.f32.mrf.mxu0  ;;  %v1887_v53 = vadd.f32 %v1886_v8, %v1885_v6 }
  0xec   :  { %v1888_v10 = vpop.f32.mrf.mxu1  ;;  %v1276_v51 = vadd.f32 %v1859_v45, %v1658_v40 }
  0xed   :  { %v1861_v9 = vpop.f32.mrf.mxu0 }
  0xee   :  { %v1889_v12 = vpop.f32.mrf.mxu1  ;;  %v1862_v48 = vadd.f32 %v1861_v9, %v1860_v7  ;;  %v1325_v61 = vadd.f32 %v1887_v53, %v1276_v51 }
  0xef   :  { %v1863_v11 = vpop.f32.mrf.mxu0  ;;  %v1890_v58 = vadd.f32 %v1889_v12, %v1888_v10 }
  0xf0   :  { %v1891_v14 = vpop.f32.mrf.mxu1  ;;  %v1281_v57 = vadd.f32 %v1862_v48, %v1658_v40 }
  0xf1   :  { %v1864_v13 = vpop.f32.mrf.mxu0 }
  0xf2   :  { %v1892_v16 = vpop.f32.mrf.mxu1  ;;  %v1865_v59 = vadd.f32 %v1864_v13, %v1863_v11  ;;  %v1330_v3 = vadd.f32 %v1890_v58, %v1281_v57 }
  0xf3   :  { %v1893_v5 = vadd.f32 %v1892_v16, %v1891_v14 }
  0xf4   :  { %v1284_v4 = vadd.f32 %v1865_v59, %v1658_v40 }
 0x103   :  { %v1910_v15 = vpop.f32.mrf.mxu0 }
 0x104   :  { %v1938_v18 = vpop.f32.mrf.mxu1 }
 0x105   :  { %v1911_v17 = vpop.f32.mrf.mxu0 }
 0x106   :  { %v1939_v20 = vpop.f32.mrf.mxu1  ;;  %v1912_v47 = vadd.f32 %v1911_v17, %v1910_v15 }
 0x107   :  { %v1913_v19 = vpop.f32.mrf.mxu0  ;;  %v1940_v55 = vadd.f32 %v1939_v20, %v1938_v18 }
 0x108   :  { %v1941_v22 = vpop.f32.mrf.mxu1  ;;  %v1371_v54 = vadd.f32 %v1912_v47, %v1322_v50 }
 0x109   :  { %v1914_v21 = vpop.f32.mrf.mxu0 }
 0x10a   :  { %v1942_v24 = vpop.f32.mrf.mxu1  ;;  %v1915_v56 = vadd.f32 %v1914_v21, %v1913_v19  ;;  %v1420_v1 = vadd.f32 %v1940_v55, %v1371_v54 }
 0x10b   :  { %v1916_v23 = vpop.f32.mrf.mxu0  ;;  %v1943_v9 = vadd.f32 %v1942_v24, %v1941_v22 }
 0x10c   :  { %v1944_v25 = vpop.f32.mrf.mxu1  ;;  %v1374_v2 = vadd.f32 %v1915_v56, %v1325_v61 }
 0x10d   :  { %v1917_v26 = vpop.f32.mrf.mxu0 }
 0x10e   :  { %v1945_v27 = vpop.f32.mrf.mxu1  ;;  %v1918_v0 = vadd.f32 %v1917_v26, %v1916_v23  ;;  %v1423_v11 = vadd.f32 %v1943_v9, %v1374_v2  ;;  %v1333_v23 = vadd.f32 %v1893_v5, %v1284_v4 }
 0x10f   :  { %v1919_v28 = vpop.f32.mrf.mxu0  ;;  %v1946_v19 = vadd.f32 %v1945_v27, %v1944_v25 }
 0x110   :  { %v2690_v29 = vpop.f32.mrf.mxu1  ;;  %v1379_v18 = vadd.f32 %v1918_v0, %v1330_v3 }
 0x111   :  { %v1920_v30 = vpop.f32.mrf.mxu0 }
 0x112   :  { %v1948_v32 = vpop.f32.mrf.mxu1  ;;  %v1921_v12 = vadd.f32 %v1920_v30, %v1919_v28  ;;  %v1428_v14 = vadd.f32 %v1946_v19, %v1379_v18 }
 0x113   :  { %v1949_v24 = vadd.f32 %v1948_v32, %v2690_v29 }
 0x114   :  { %v1382_v22 = vadd.f32 %v1921_v12, %v1333_v23 }
 0x116   :  { %v1431_v45 = vadd.f32 %v1949_v24, %v1382_v22 }
 0x123   :  { %v1966_v31 = vpop.f32.mrf.mxu0 }
 0x124   :  { %v1994_v33 = vpop.f32.mrf.mxu1 }
 0x125   :  { %v1967_v34 = vpop.f32.mrf.mxu0 }
 0x126   :  { %v1995_v35 = vpop.f32.mrf.mxu1  ;;  %v1968_v62 = vadd.f32 %v1967_v34, %v1966_v31 }
 0x127   :  { %v1969_v36 = vpop.f32.mrf.mxu0  ;;  %v1996_v6 = vadd.f32 %v1995_v35, %v1994_v33 }
 0x128   :  { %v1997_v37 = vpop.f32.mrf.mxu1  ;;  %v1469_v15 = vadd.f32 %v1968_v62, %v1420_v1 }
 0x129   :  { %v1970_v38 = vpop.f32.mrf.mxu0 }
 0x12a   :  { %v1998_v41 = vpop.f32.mrf.mxu1  ;;  %v1971_v8 = vadd.f32 %v1970_v38, %v1969_v36  ;;  %v1518_v26 = vadd.f32 %v1996_v6, %v1469_v15 }
 0x12b   :  { %v1972_v42 = vpop.f32.mrf.mxu0  ;;  %v1999_v33 = vadd.f32 %v1998_v41, %v1997_v37 }
 0x12c   :  { %v2000_v46 = vpop.f32.mrf.mxu1  ;;  %v1472_v31 = vadd.f32 %v1971_v8, %v1423_v11 }
 0x12d   :  { %v1973_v49 = vpop.f32.mrf.mxu0 }
 0x12e   :  { %v2001_v52 = vpop.f32.mrf.mxu1  ;;  %v1974_v20 = vadd.f32 %v1973_v49, %v1972_v42  ;;  %v1521_v28 = vadd.f32 %v1999_v33, %v1472_v31 }
 0x12f   :  { %v1975_v60 = vpop.f32.mrf.mxu0  ;;  %v2002_v27 = vadd.f32 %v2001_v52, %v2000_v46 }
 0x130   :  { %v2003_v63 = vpop.f32.mrf.mxu1  ;;  %v1477_v25 = vadd.f32 %v1974_v20, %v1428_v14 }
 0x131   :  { %v1976_v7 = vpop.f32.mrf.mxu0 }
 0x132   :  { %v2004_v17 = vpop.f32.mrf.mxu1  ;;  %v1977_v30 = vadd.f32 %v1976_v7, %v1975_v60  ;;  %v1526_v51 = vadd.f32 %v2002_v27, %v1477_v25 }
 0x133   :  { %v2005_v32 = vadd.f32 %v2004_v17, %v2003_v63 }
 0x134   :  { %v1480_v29 = vadd.f32 %v1977_v30, %v1431_v45 }
 0x136   :  { %v1529_v59 = vadd.f32 %v2005_v32, %v1480_v29 }
 0x143   :  { %v2022_v10 = vpop.f32.mrf.mxu0 }
 0x144   :  { %v2050_v13 = vpop.f32.mrf.mxu1 }
 0x145   :  { %v2023_v21 = vpop.f32.mrf.mxu0 }
 0x146   :  { %v2024_v34 = vadd.f32 %v2023_v21, %v2022_v10  ;;  %v2051_v39 = vpop.f32.mrf.mxu1 }
 0x147   :  { %v2025_v16 = vpop.f32.mrf.mxu0  ;;  %v2052_v40 = vadd.f32 %v2051_v39, %v2050_v13 }
 0x148   :  { %v1567_v35 = vadd.f32 %v2024_v34, %v1518_v26  ;;  %v2053_v36 = vpop.f32.mrf.mxu1 }
 0x149   :  { %v2026_v38 = vpop.f32.mrf.mxu0 }
 0x14a   :  { %v2027_v42 = vadd.f32 %v2026_v38, %v2025_v16  ;;  %v2054_v43 = vpop.f32.mrf.mxu1  ;;  %v1616_v47 = vadd.f32 %v2052_v40, %v1567_v35 }
 0x14b   :  { %v2028_v44 = vpop.f32.mrf.mxu0  ;;  %v2055_v49 = vadd.f32 %v2054_v43, %v2053_v36 }
 0x14c   :  { %v1570_v48 = vadd.f32 %v2027_v42, %v1521_v28  ;;  %v2056_v50 = vpop.f32.mrf.mxu1  ;;  %v1630_v52 = vmax.f32 %v1616_v47, 0.0 }
 0x14d   :  { %v2029_v53 = vpop.f32.mrf.mxu0 }
 0x14e   :  { %v1619_v37 = vadd.f32 %v2055_v49, %v1570_v48  ;;  %v2030_v41 = vadd.f32 %v2029_v53, %v2028_v44  ;;  %v2057_v54 = vpop.f32.mrf.mxu1 }
 0x14f   :  { %v2031_v46 = vpop.f32.mrf.mxu0  ;;  %v2058_v61 = vadd.f32 %v2057_v54, %v2056_v50 }
 0x150   :  { %v1631_v55 = vmax.f32 %v1619_v37, 0.0  ;;  %v1575_v56 = vadd.f32 %v2030_v41, %v1526_v51  ;;  %v2059_v57 = vpop.f32.mrf.mxu1 }
 0x151   :  { %v2032_v58 = vpop.f32.mrf.mxu0 }
 0x152   :  { %v1830_v60 = vpack.c.bf16 %v1631_v55, %v1630_v52  ;;  %v2033_v62 = vadd.f32 %v2032_v58, %v2031_v46  ;;  %v2060_v0 = vpop.f32.mrf.mxu1  ;;  %v1624_v1 = vadd.f32 %v2058_v61, %v1575_v56 }
 0x153   :  { %v2061_v2 = vadd.f32 %v2060_v0, %v2059_v57 }
 0x154   :  { %1831 = vst [vmem:[%s2705_s3] sm:$0xff] %v1830_v60   ;;  %v1578_v63 = vadd.f32 %v2033_v62, %v1529_v59  ;;  %v1632_v4 = vmax.f32 %v1624_v1, 0.0 }
 0x156   :  { %v1627_v3 = vadd.f32 %v2061_v2, %v1578_v63 }
 0x158   :  { %v1633_v5 = vmax.f32 %v1627_v3, 0.0 }
 0x15a   :  { %v1835_v7 = vpack.c.bf16 %v1633_v5, %v1632_v4 }
 0x15c   :  { %1837 = vst [vmem:[%s2705_s3 + $0x8] sm:$0xff] %v1835_v7  }

// kernel: vqvae_forward.12
= control target key start
LH: loop header
LB: loop body
LE: loop exit
PB: predicated region body
PF: predicated region fallthrough
CT: control target
= control target key end

     0   :  { %s684_s12 = smov 0   ;;  %s808_s0 = inlined_call_operand.vmem [shape: bf16[8,4,128], index: 0, kind: input, shape index: {}]   ;;  %s809_s1 = inlined_call_operand.vmem [shape: bf16[128,512], index: 1, kind: input, shape index: {}]   ;;  %s810_s2 = inlined_call_operand.vmem [shape: f32[1,512], index: 2, kind: input, shape index: {}]   ;;  %s811_s3 = inlined_call_operand.vmem [shape: bf16[8,2,4,256], index: 3, kind: output, shape index: {}]  }
   0x1 LB: > { %s550_s13 = sadd.s32 4294967295, %s661_s12   ;;  %p554_p0 = scmp.ge.s32.totalorder %s661_s12, 1  ;;  %s661_s12 = sphi %s684_s12, %s13_s12  }
   0x2   : > { %p136_p1 = scmp.lt.s32.totalorder %s661_s12, 9 }
   0x4   : > { %p137_p2 = pnand %p554_p0, %p136_p1 }
   0x5   : > { %p159_p3 = scmp.lt.s32.totalorder (!%p137_p2), %s550_s13, 7 }
   0x6   : > { %140 = sbr.rel (%p137_p2) target bundleno = 246 (0xf6), region = 32 }
   0xb   : > { %v607_v0 = vld [vmem:[%s809_s1 + $0xe4] ss:$16 sps:$4 sm:$0xff]   ;;  %v609_v1 = vld [vmem:[%s809_s1 + $0xec] ss:$16 sps:$4 sm:$0xff]   ;;  %v663_v2 = vmov 0   ;;  %s813_s13 = smov (!%p159_p3, %s550_s13), 7  ;;  %v204_v34 = vlaneseq }
   0xc   : > { %416 = vmatprep.mubr.bf16.mxu0 %v663_v2  ;;  %457 = vmatprep.mubr.bf16.mxu1 %v663_v2  ;;  %v611_v3 = vld [vmem:[%s809_s1 + $0xe0] ss:$16 sps:$4 sm:$0xff]   ;;  %v612_v4 = vld [vmem:[%s809_s1 + $0xe8] ss:$16 sps:$4 sm:$0xff]   ;;  %v613_v5 = vld [vmem:[%s809_s1 + $0xc4] ss:$16 sps:$4 sm:$0xff]  }
   0xd   : > { %384 = vmatprep.subr.bf16.mxu0 %v607_v0  ;;  %425 = vmatprep.subr.bf16.mxu1 %v609_v1  ;;  %v615_v6 = vld [vmem:[%s809_s1 + $0xcc] ss:$16 sps:$4 sm:$0xff]   ;;  %v617_v7 = vld [vmem:[%s809_s1 + $0xc0] ss:$16 sps:$4 sm:$0xff]   ;;  %v618_v8 = vld [vmem:[%s809_s1 + $0xc8] ss:$16 sps:$4 sm:$0xff]  }
   0xe   : > { %385 = vmatpush1.bf16.msra.mxu0 %v611_v3  ;;  %426 = vmatpush1.bf16.msra.mxu1 %v612_v4  ;;  %v619_v9 = vld [vmem:[%s809_s1 + $0xa4] ss:$16 sps:$4 sm:$0xff]   ;;  %v621_v10 = vld [vmem:[%s809_s1 + $0xac] ss:$16 sps:$4 sm:$0xff]   ;;  %v623_v11 = vld [vmem:[%s809_s1 + $0xa0] ss:$16 sps:$4 sm:$0xff]  }
   0xf   : > { %386 = vmatprep.subr.bf16.mxu0 %v613_v5  ;;  %427 = vmatprep.subr.bf16.mxu1 %v615_v6  ;;  %v624_v12 = vld [vmem:[%s809_s1 + $0xa8] ss:$16 sps:$4 sm:$0xff]   ;;  %v625_v13 = vld [vmem:[%s809_s1 + $0x84] ss:$16 sps:$4 sm:$0xff]   ;;  %v627_v14 = vld [vmem:[%s809_s1 + $0x8c] ss:$16 sps:$4 sm:$0xff]  }
  0x10   : > { %v629_v15 = vld [vmem:[%s809_s1 + $0x80] ss:$16 sps:$4 sm:$0xff]   ;;  %v630_v16 = vld [vmem:[%s809_s1 + $0x88] ss:$16 sps:$4 sm:$0xff]   ;;  %v631_v17 = vld [vmem:[%s809_s1 + $0x64] ss:$16 sps:$4 sm:$0xff]  }
  0x11   : > { %v633_v18 = vld [vmem:[%s809_s1 + $0x6c] ss:$16 sps:$4 sm:$0xff]   ;;  %v635_v19 = vld [vmem:[%s809_s1 + $0x60] ss:$16 sps:$4 sm:$0xff]   ;;  %v636_v20 = vld [vmem:[%s809_s1 + $0x68] ss:$16 sps:$4 sm:$0xff]  }
  0x12   : > { %387 = vmatpush1.bf16.msra.mxu0 %v617_v7  ;;  %428 = vmatpush1.bf16.msra.mxu1 %v618_v8  ;;  %v637_v21 = vld [vmem:[%s809_s1 + $0x44] ss:$16 sps:$4 sm:$0xff]   ;;  %v639_v22 = vld [vmem:[%s809_s1 + $0x4c] ss:$16 sps:$4 sm:$0xff]   ;;  %v641_v23 = vld [vmem:[%s809_s1 + $0x40] ss:$16 sps:$4 sm:$0xff]  }
  0x13   : > { %388 = vmatprep.subr.bf16.mxu0 %v619_v9  ;;  %429 = vmatprep.subr.bf16.mxu1 %v621_v10  ;;  %v642_v24 = vld [vmem:[%s809_s1 + $0x48] ss:$16 sps:$4 sm:$0xff]   ;;  %v643_v25 = vld [vmem:[%s809_s1 + $0x24] ss:$16 sps:$4 sm:$0xff]   ;;  %v645_v26 = vld [vmem:[%s809_s1 + $0x2c] ss:$16 sps:$4 sm:$0xff]  }
  0x14   : > { %v647_v27 = vld [vmem:[%s809_s1 + $0x20] ss:$16 sps:$4 sm:$0xff]   ;;  %v648_v28 = vld [vmem:[%s809_s1 + $0x28] ss:$16 sps:$4 sm:$0xff]   ;;  %v649_v29 = vld [vmem:[%s809_s1 + $0x4] ss:$16 sps:$4 sm:$0xff]  }
  0x15   : > { %v651_v30 = vld [vmem:[%s809_s1 + $0xc] ss:$16 sps:$4 sm:$0xff]   ;;  %s555_s24 = sshll.u32 %s813_s13, 1  ;;  %v653_v31 = vld [vmem:[%s809_s1] ss:$16 sps:$4 sm:$0xff]   ;;  %v205_v35 = vshrl.u32 %v204_v34, 7 }
  0x16   : > { %389 = vmatpush1.bf16.msra.mxu0 %v623_v11  ;;  %430 = vmatpush1.bf16.msra.mxu1 %v624_v12  ;;  %v654_v32 = vld [vmem:[%s809_s1 + $0x8] ss:$16 sps:$4 sm:$0xff]   ;;  %s162_s4 = scalar_lea.vmem %s808_s0, %s555_s24  ;;  %v202_v40 = vld [vmem:[%s810_s2] sm:$0xf]  ;;  %s596_s7 = sshll.u32 %s813_s13, 3 }
  0x17   : > { %390 = vmatprep.subr.bf16.mxu0 %v625_v13  ;;  %431 = vmatprep.subr.bf16.mxu1 %v627_v14  ;;  %v169_v33 = vld [vmem:[%s162_s4] sm:$0x3]  ;;  %v206_v36 = vsub.s32 0, %v205_v35  ;;  %v214_v37 = vsub.s32 2, %v205_v35  ;;  %v210_v38 = vsub.s32 1, %v205_v35  ;;  %v218_v39 = vsub.s32 3, %v205_v35  ;;  %s167_s10 = scalar_lea.vmem %s811_s3, %s596_s7 }
  0x19   : > { %v207_v41 = vrot.slane %v202_v40, %v206_v36  ;;  %v215_v42 = vrot.slane %v202_v40, %v214_v37  ;;  %v211_v43 = vrot.slane %v202_v40, %v210_v38  ;;  %v219_v44 = vrot.slane %v202_v40, %v218_v39 }
  0x1a   : > { %391 = vmatpush1.bf16.msra.mxu0 %v629_v15  ;;  %432 = vmatpush1.bf16.msra.mxu1 %v630_v16 }
  0x1b   : > { %392 = vmatprep.subr.bf16.mxu0 %v631_v17  ;;  %433 = vmatprep.subr.bf16.mxu1 %v633_v18 }
  0x1e   : > { %393 = vmatpush1.bf16.msra.mxu0 %v635_v19  ;;  %434 = vmatpush1.bf16.msra.mxu1 %v636_v20 }
  0x1f   : > { %394 = vmatprep.subr.bf16.mxu0 %v637_v21  ;;  %435 = vmatprep.subr.bf16.mxu1 %v639_v22 }
  0x22   : > { %395 = vmatpush1.bf16.msra.mxu0 %v641_v23  ;;  %436 = vmatpush1.bf16.msra.mxu1 %v642_v24 }
  0x23   : > { %396 = vmatprep.subr.bf16.mxu0 %v643_v25  ;;  %437 = vmatprep.subr.bf16.mxu1 %v645_v26 }
  0x26   : > { %397 = vmatpush1.bf16.msra.mxu0 %v647_v27  ;;  %438 = vmatpush1.bf16.msra.mxu1 %v648_v28 }
  0x27   : > { %398 = vmatprep.subr.bf16.mxu0 %v649_v29  ;;  %439 = vmatprep.subr.bf16.mxu1 %v651_v30 }
  0x2a   : > { %399 = vmatpush1.bf16.msra.mxu0 %v653_v31  ;;  %440 = vmatpush1.bf16.msra.mxu1 %v654_v32 }
  0x2d   : > { %417 = vmatmul.mubr.bf16.vlgmr.msra.gmra.mxu0 %v169_v33  ;;  %458 = vmatmul.mubr.bf16.vlgmr.msra.gmra.mxu1 %v169_v33 }
  0xed   : > { %v418_v45 = vpop.f32.mrf.mxu0  ;;  %v459_v46 = vpop.f32.mrf.mxu1 }
  0xee   : > { %v419_v49 = vadd.f32 %v418_v45, %v207_v41  ;;  %v460_v50 = vadd.f32 %v459_v46, %v215_v42 }
  0xef   : > { %v420_v47 = vpop.f32.mrf.mxu0  ;;  %v461_v48 = vpop.f32.mrf.mxu1 }
  0xf0   : > { %v421_v51 = vadd.f32 %v420_v47, %v211_v43  ;;  %v462_v52 = vadd.f32 %v461_v48, %v219_v44 }
  0xf1   : > { %v422_v53 = vpop.f32.mrf.mxu0  ;;  %v463_v54 = vpop.f32.mrf.mxu1 }
  0xf2   : > { %v590_v55 = vpack.c.bf16 %v421_v51, %v419_v49  ;;  %v592_v56 = vpack.c.bf16 %v462_v52, %v460_v50 }
  0xf3   : > { %v423_v57 = vpop.f32.mrf.mxu0  ;;  %v464_v58 = vpop.f32.mrf.mxu1 }
  0xf4   : > { %591 = vst.sshfl [vmem:[%s167_s10] sm:$0x33 pattern:$0x76325410] %v590_v55 }
  0xf5   : > { %597 = vst.sshfl [vmem:[%s167_s10 + $0x4] sm:$0x33 pattern:$0x76325410] %v592_v56 }
  0xf6 PF: > { %s13_s12 = sadd.s32 1, %s661_s12  }
  0xf7   : > { %p10_p4 = scmp.ge.s32.totalorder %s13_s12, 10  }
  0xf9   :  { %12 = sbr.rel (!%p10_p4) target bundleno = 1 (0x1), region = 63 }

// kernel: vqvae_forward.10
= control target key start
LH: loop header
LB: loop body
LE: loop exit
PB: predicated region body
PF: predicated region fallthrough
CT: control target
= control target key end

     0   :  { %15 = vsyncpa [#allocation5], 0  ;;  %s1133_s0 = inlined_call_operand.vmem [shape: bf16[32,128], index: 0, kind: input, shape index: {}]   ;;  %s1134_s1 = inlined_call_operand.vmem [shape: bf16[128,128], index: 1, kind: input, shape index: {}]   ;;  %s1135_s2 = inlined_call_operand.vmem [shape: f32[1,128], index: 2, kind: input, shape index: {}]   ;;  %s1136_s3 = inlined_call_operand.vmem [shape: f32[128,128], index: 3, kind: input, shape index: {}]   ;;  %s1137_s4 = inlined_call_operand.vmem [shape: f32[1,128], index: 4, kind: input, shape index: {}]   ;;  %s1138_s5 = inlined_call_operand.vmem [shape: bf16[128,128], index: 5, kind: input, shape index: {}]   ;;  %s1139_s6 = inlined_call_operand.vmem [shape: f32[1,128], index: 6, kind: input, shape index: {}]   ;;  %s1140_s7 = inlined_call_operand.vmem [shape: bf16[32,128], index: 7, kind: output, shape index: {0}]   ;;  %s1141_s8 = inlined_call_operand.hbm [shape: f32[1], index: 8, kind: output, shape index: {1}]   ;;  %s1142_s9 = inlined_call_operand.hbm [shape: f32[1], index: 9, kind: output, shape index: {2}]  }
   0x1   :  { %v886_v0 = vld [vmem:[%s1134_s1 + $0x38] sm:$0xff]   ;;  %v887_v1 = vld [vmem:[%s1134_s1 + $0x30] sm:$0xff]   ;;  %v888_v2 = vld [vmem:[%s1134_s1 + $0x28] sm:$0xff]  }
   0x2   :  { %760 = vmatprep.subr.bf16.mxu0 %v886_v0  ;;  %v889_v3 = vld [vmem:[%s1134_s1 + $0x20] sm:$0xff]   ;;  %v198_v5 = vld [vmem:[%s1136_s3 + $0x78] sm:$0xff]  ;;  %v197_v6 = vld [vmem:[%s1136_s3 + $0x70] sm:$0xff] }
   0x3   :  { %761 = vmatpush3.bf16.msra.mxu0 %v886_v0  ;;  %v999_v4 = vld [vmem:[%s1133_s0] sm:$0xff]   ;;  %780 = vmatprep.subr.mxu1 %v198_v5  ;;  %v890_v7 = vld [vmem:[%s1134_s1 + $0x18] sm:$0xff]   ;;  %v196_v8 = vld [vmem:[%s1136_s3 + $0x68] sm:$0xff] }
   0x4   :  { %762 = vmatprep.subr.bf16.mxu0 %v887_v1  ;;  %781 = vmatpush3.xpose.msra.mxu1 %v198_v5  ;;  %v891_v9 = vld [vmem:[%s1134_s1 + $0x10] sm:$0xff]   ;;  %v195_v10 = vld [vmem:[%s1136_s3 + $0x60] sm:$0xff] }
   0x5   :  { %776 = vmatprep.mubr.bf16.mxu0 %v999_v4  ;;  %782 = vmatprep.subr.mxu1 %v197_v6 }
   0x7   :  { %763 = vmatpush3.bf16.msra.mxu0 %v887_v1 }
   0x8   :  { %764 = vmatprep.subr.bf16.mxu0 %v888_v2  ;;  %783 = vmatpush3.xpose.msra.mxu1 %v197_v6 }
   0x9   :  { %784 = vmatprep.subr.mxu1 %v196_v8 }
   0xb   :  { %765 = vmatpush3.bf16.msra.mxu0 %v888_v2 }
   0xc   :  { %766 = vmatprep.subr.bf16.mxu0 %v889_v3  ;;  %785 = vmatpush3.xpose.msra.mxu1 %v196_v8 }
   0xf   :  { %767 = vmatpush3.bf16.msra.mxu0 %v889_v3 }
  0x10   :  { %768 = vmatprep.subr.bf16.mxu0 %v890_v7 }
  0x11   :  { %16 = vsyncpa [#allocation7], 0  ;;  %786 = vmatprep.subr.mxu1 %v195_v10  ;;  %v892_v11 = vld [vmem:[%s1134_s1 + $0x8] sm:$0xff]   ;;  %v194_v12 = vld [vmem:[%s1136_s3 + $0x58] sm:$0xff]  ;;  %v175_v27 = vunpack.c.l.bf16 %v999_v4  ;;  %v176_v32 = vunpack.c.h.bf16 %v999_v4  ;;  %v930_v56 = vmov 0.0   ;;  %v307_v58 = vlaneseq }
  0x12   :  { %787 = vmatpush3.xpose.msra.mxu1 %v195_v10  ;;  %v893_v13 = vld [vmem:[%s1134_s1] sm:$0xff]   ;;  %v193_v14 = vld [vmem:[%s1136_s3 + $0x50] sm:$0xff]  ;;  %v1035_v15 = vld [vmem:[%s1133_s0 + $0x8] sm:$0xff]   ;;  %36 = vst [vmem:[#allocation2] sm:$0x1] %v930_v56  ;;  %v931_v61 = vmov 1.0  }
  0x13   :  { %769 = vmatpush3.bf16.msra.mxu0 %v890_v7  ;;  %788 = vmatprep.subr.mxu1 %v194_v12  ;;  %v192_v16 = vld [vmem:[%s1136_s3 + $0x48] sm:$0xff]  ;;  %v191_v17 = vld [vmem:[%s1136_s3 + $0x40] sm:$0xff]  ;;  %v190_v18 = vld [vmem:[%s1136_s3 + $0x38] sm:$0xff]  ;;  %v177_v35 = vunpack.c.l.bf16 %v1035_v15  ;;  %v178_v39 = vunpack.c.h.bf16 %v1035_v15  ;;  %v308_v59 = vand.u32 127, %v307_v58  ;;  %vm605_vm4 = vcmask 1040384  }
  0x14   :  { %770 = vmatprep.subr.bf16.mxu0 %v891_v9  ;;  %v189_v19 = vld [vmem:[%s1136_s3 + $0x30] sm:$0xff]  ;;  %v188_v20 = vld [vmem:[%s1136_s3 + $0x28] sm:$0xff]  ;;  %v187_v21 = vld [vmem:[%s1136_s3 + $0x20] sm:$0xff] }
  0x15   :  { %v186_v22 = vld [vmem:[%s1136_s3 + $0x18] sm:$0xff]  ;;  %v185_v23 = vld [vmem:[%s1136_s3 + $0x10] sm:$0xff]  ;;  %v184_v24 = vld [vmem:[%s1136_s3 + $0x8] sm:$0xff] }
  0x16   :  { %789 = vmatpush3.xpose.msra.mxu1 %v194_v12  ;;  %v183_v25 = vld [vmem:[%s1136_s3] sm:$0xff]  ;;  %v896_v57 = vld [vmem:[%s1138_s5 + $0x38] sm:$0xff]   ;;  %v897_v0 = vld [vmem:[%s1138_s5 + $0x30] sm:$0xff]  }
  0x17   :  { %771 = vmatpush3.bf16.msra.mxu0 %v891_v9  ;;  %790 = vmatprep.subr.mxu1 %v193_v14  ;;  %v652_v28 = vld [vmem:[%s1135_s2] ss:$0 sm:$0xff]  ;;  %s932_s2 = smov [#allocation4]  }
  0x18   :  { %772 = vmatprep.subr.bf16.mxu0 %v892_v11  ;;  %v663_v47 = vld [vmem:[%s1137_s4] ss:$0 sm:$0xff]  ;;  %s933_s4 = smov [#allocation6]  }
  0x1a   :  { %791 = vmatpush3.xpose.msra.mxu1 %v193_v14 }
  0x1b   :  { %773 = vmatpush3.bf16.msra.mxu0 %v892_v11  ;;  %792 = vmatprep.subr.mxu1 %v192_v16 }
  0x1c   :  { %774 = vmatprep.subr.bf16.mxu0 %v893_v13 }
  0x1e   :  { %793 = vmatpush3.xpose.msra.mxu1 %v192_v16 }
  0x1f   :  { %775 = vmatpush3.bf16.msra.mxu0 %v893_v13  ;;  %794 = vmatprep.subr.mxu1 %v191_v17  ;;  %v900_v13 = vld [vmem:[%s1138_s5 + $0x18] sm:$0xff]  }
  0x20   :  { %818 = vmatprep.subr.mxu0 %v198_v5 }
  0x22   :  { %777 = vmatmul.mubr.bf16.vlgmr.msra.gmra.mxu0 %v1035_v15  ;;  %795 = vmatpush3.xpose.msra.mxu1 %v191_v17 }
  0x23   :  { %819 = vmatpush3.msra.mxu0 %v198_v5  ;;  %796 = vmatprep.subr.mxu1 %v190_v18 }
  0x24   :  { %820 = vmatprep.subr.mxu0 %v197_v6 }
  0x25   :  { %821 = vmatpush3.msra.mxu0 %v197_v6  ;;  %v898_v6 = vld [vmem:[%s1138_s5 + $0x28] sm:$0xff]  }
  0x26   :  { %822 = vmatprep.subr.mxu0 %v196_v8  ;;  %797 = vmatpush3.xpose.msra.mxu1 %v190_v18 }
  0x27   :  { %823 = vmatpush3.msra.mxu0 %v196_v8  ;;  %798 = vmatprep.subr.mxu1 %v189_v19 }
  0x28   :  { %824 = vmatprep.subr.mxu0 %v195_v10 }
  0x29   :  { %825 = vmatpush3.msra.mxu0 %v195_v10  ;;  %v899_v10 = vld [vmem:[%s1138_s5 + $0x20] sm:$0xff]  }
  0x2a   :  { %826 = vmatprep.subr.mxu0 %v194_v12  ;;  %799 = vmatpush3.xpose.msra.mxu1 %v189_v19 }
  0x2b   :  { %827 = vmatpush3.msra.mxu0 %v194_v12  ;;  %800 = vmatprep.subr.mxu1 %v188_v20 }
  0x2c   :  { %828 = vmatprep.subr.mxu0 %v193_v14 }
  0x2d   :  { %829 = vmatpush3.msra.mxu0 %v193_v14 }
  0x2e   :  { %830 = vmatprep.subr.mxu0 %v192_v16  ;;  %801 = vmatpush3.xpose.msra.mxu1 %v188_v20 }
  0x2f   :  { %831 = vmatpush3.msra.mxu0 %v192_v16  ;;  %802 = vmatprep.subr.mxu1 %v187_v21  ;;  %v901_v16 = vld [vmem:[%s1138_s5 + $0x10] sm:$0xff]  }
  0x30   :  { %832 = vmatprep.subr.mxu0 %v191_v17 }
  0x31   :  { %833 = vmatpush3.msra.mxu0 %v191_v17 }
  0x32   :  { %834 = vmatprep.subr.mxu0 %v190_v18  ;;  %803 = vmatpush3.xpose.msra.mxu1 %v187_v21 }
  0x33   :  { %835 = vmatpush3.msra.mxu0 %v190_v18  ;;  %804 = vmatprep.subr.mxu1 %v186_v22  ;;  %v430_v18 = vld [vmem:[#allocation2] sm:$0x1] }
  0x34   :  { %836 = vmatprep.subr.mxu0 %v189_v19 }
  0x35   :  { %837 = vmatpush3.msra.mxu0 %v189_v19 }
  0x36   :  { %838 = vmatprep.subr.mxu0 %v188_v20  ;;  %805 = vmatpush3.xpose.msra.mxu1 %v186_v22 }
  0x37   :  { %839 = vmatpush3.msra.mxu0 %v188_v20  ;;  %806 = vmatprep.subr.mxu1 %v185_v23 }
  0x38   :  { %840 = vmatprep.subr.mxu0 %v187_v21 }
  0x39   :  { %841 = vmatpush3.msra.mxu0 %v187_v21 }
  0x3a   :  { %842 = vmatprep.subr.mxu0 %v186_v22  ;;  %807 = vmatpush3.xpose.msra.mxu1 %v185_v23 }
  0x3b   :  { %843 = vmatpush3.msra.mxu0 %v186_v22  ;;  %808 = vmatprep.subr.mxu1 %v184_v24 }
  0x3c   :  { %844 = vmatprep.subr.mxu0 %v185_v23 }
  0x3d   :  { %845 = vmatpush3.msra.mxu0 %v185_v23 }
  0x3e   :  { %846 = vmatprep.subr.mxu0 %v184_v24  ;;  %809 = vmatpush3.xpose.msra.mxu1 %v184_v24 }
  0x3f   :  { %847 = vmatpush3.msra.mxu0 %v184_v24  ;;  %810 = vmatprep.subr.mxu1 %v183_v25 }
  0x40   :  { %848 = vmatprep.subr.mxu0 %v183_v25 }
  0x41   :  { %849 = vmatpush3.msra.mxu0 %v183_v25 }
  0x42   :  { %811 = vmatpush3.xpose.msra.mxu1 %v183_v25  ;;  %856 = vmatprep.subr.bf16.mxu0 %v896_v57 }
  0xe2   :  { %v778_v26 = vpop.f32.mrf.mxu0 }
  0xe3   :  { %v169_v34 = vadd.f32 %v778_v26, %v652_v28 }
  0xe4   :  { %v160_v29 = vpop.f32.mrf.mxu0 }
  0xe5   :  { %v161_v30 = vadd.f32 %v652_v28, %v160_v29  ;;  %v1080_v41 = vadd.f32 %v177_v35, %v169_v34  ;;  %v903_v29 = vld [vmem:[%s1138_s5] sm:$0xff]  }
  0xe6   :  { %v779_v31 = vpop.f32.mrf.mxu0 }
  0xe7   :  { %v1073_v33 = vadd.f32 %v175_v27, %v161_v30  ;;  %v172_v38 = vadd.f32 %v779_v31, %v652_v28 }
  0xe8   :  { %v163_v36 = vpop.f32.mrf.mxu0 }
  0xe9   :  { %v164_v37 = vadd.f32 %v652_v28, %v163_v36  ;;  %812 = vmatprep.mubr.f32.mxu1 %v1073_v33  ;;  %v1084_v42 = vadd.f32 %v178_v39, %v172_v38  ;;  %v902_v28 = vld [vmem:[%s1138_s5 + $0x8] sm:$0xff]  }
  0xeb   :  { %v1078_v40 = vadd.f32 %v176_v32, %v164_v37 }
  0xed   :  { %813 = vmatmul.mubr.f32.vlgmr.msra.gmra.mxu1 %v1078_v40 }
  0xee   :  { %815 = vmatprep.mubr.f32.mxu1 %v1080_v41 }
  0xf1   :  { %816 = vmatmul.mubr.f32.gmra.mxu1 %v1084_v42 }
 0x1ad   :  { %v814_v43 = vpop.f32.mrf.mxu1 }
 0x1ae   :  { %v286_v48 = vmul.f32 2.0, %v814_v43 }
 0x1af   :  { %v265_v44 = vpop.f32.mrf.mxu1 }
 0x1b0   :  { %v285_v45 = vmul.f32 2.0, %v265_v44  ;;  %v296_v53 = vsub.f32 %v663_v47, %v286_v48 }
 0x1b1   :  { %v817_v46 = vpop.f32.mrf.mxu1 }
 0x1b2   :  { %v295_v49 = vsub.f32 %v663_v47, %v285_v45  ;;  %v288_v52 = vmul.f32 2.0, %v817_v46 }
 0x1b3   :  { %v275_v50 = vpop.f32.mrf.mxu1 }
 0x1b4   :  { %v287_v51 = vmul.f32 2.0, %v275_v50  ;;  %299 = vmin.index.xlane.f32.xlu0 %v295_v49  ;;  %v298_v55 = vsub.f32 %v663_v47, %v288_v52 }
 0x1b6   :  { %v297_v54 = vsub.f32 %v663_v47, %v287_v51 }
 0x1b8   :  { %301 = vmin.index.xlane.f32.xlu0 %v296_v53  ;;  %303 = vmin.index.xlane.f32.xlu1 %v297_v54 }
 0x1bc   :  { %305 = vmin.index.xlane.f32.xlu1 %v298_v55 }
 0x23d   :  { %v300_v60 = vpop.xlane.xlu0 %299 }
 0x23e   :  { %vm309_vm0 = vcmp.eq.s32.totalorder %v308_v59, %v300_v60 }
 0x23f   :  { %850 = vmatprep.mubr.msk.f32.mxu0 %vm309_vm0, %v931_v61  ;;  %v664_v1 = vsel %vm309_vm0, 1.0, %v930_v56 }
 0x241   :  { %v302_v62 = vpop.xlane.xlu0 %301  ;;  %v304_v63 = vpop.xlane.xlu1 %303 }
 0x242   :  { %vm310_vm1 = vcmp.eq.s32.totalorder %v308_v59, %v302_v62  ;;  %vm311_vm2 = vcmp.eq.s32.totalorder %v308_v59, %v304_v63 }
 0x243   :  { %v665_v2 = vsel %vm310_vm1, 1.0, %v930_v56  ;;  %851 = vmatmul.mubr.msk.f32.vlgmr.msra.gmra.mxu0 %vm310_vm1, %v931_v61  ;;  %v666_v4 = vsel %vm311_vm2, 1.0, %v930_v56 }
 0x244   :  { %v431_v3 = vadd.f32 %v665_v2, %v664_v1  ;;  %853 = vmatprep.mubr.msk.f32.mxu0 %vm311_vm2, %v931_v61  ;;  %857 = vmatpush3.bf16.msra.mxu0 %v896_v57 }
 0x245   :  { %v306_v5 = vpop.xlane.xlu1 %305  ;;  %858 = vmatprep.subr.bf16.mxu0 %v897_v0 }
 0x246   :  { %v432_v7 = vadd.f32 %v666_v4, %v431_v3  ;;  %vm312_vm3 = vcmp.eq.s32.totalorder %v308_v59, %v306_v5 }
 0x247   :  { %v667_v8 = vsel %vm312_vm3, 1.0, %v930_v56  ;;  %854 = vmatmul.mubr.msk.f32.gmra.mxu0 %vm312_vm3, %v931_v61  ;;  %v672_v61 = vld [vmem:[%s1139_s6] ss:$0 sm:$0xff] }
 0x248   :  { %v433_v9 = vadd.f32 %v667_v8, %v432_v7  ;;  %859 = vmatpush3.bf16.msra.mxu0 %v897_v0 }
 0x249   :  { %860 = vmatprep.subr.bf16.mxu0 %v898_v6 }
 0x24a   :  { %v434_v11 = vrot.slane %v433_v9, 4 }
 0x24c   :  { %v435_v12 = vadd.f32 %v434_v11, %v433_v9  ;;  %861 = vmatpush3.bf16.msra.mxu0 %v898_v6 }
 0x24d   :  { %862 = vmatprep.subr.bf16.mxu0 %v899_v10 }
 0x24e   :  { %v436_v14 = vrot.slane %v435_v12, 2 }
 0x250   :  { %v437_v15 = vadd.f32 %v436_v14, %v435_v12  ;;  %863 = vmatpush3.bf16.msra.mxu0 %v899_v10 }
 0x251   :  { %864 = vmatprep.subr.bf16.mxu0 %v900_v13 }
 0x252   :  { %v438_v17 = vrot.slane %v437_v15, 1 }
 0x254   :  { %v439_v19 = vadd.f32 %v438_v17, %v437_v15  ;;  %865 = vmatpush3.bf16.msra.mxu0 %v900_v13 }
 0x255   :  { %866 = vmatprep.subr.bf16.mxu0 %v901_v16 }
 0x256   :  { %v440_v20 = vadd.f32 %v439_v19, %v430_v18 }
 0x258   :  { %441 = vst [vmem:[#allocation2] sm:$0x1] %v440_v20  ;;  %867 = vmatpush3.bf16.msra.mxu0 %v901_v16 }
 0x259   :  { %868 = vmatprep.subr.bf16.mxu0 %v902_v28 }
 0x25c   :  { %869 = vmatpush3.bf16.msra.mxu0 %v902_v28 }
 0x25d   :  { %870 = vmatprep.subr.bf16.mxu0 %v903_v29 }
 0x25f   :  { %v599_v21 = vld [vmem:[#allocation2] sm:$0x1] }
 0x260   :  { %v600_v22 = vmul.f32 0.03125, %v599_v21  ;;  %871 = vmatpush3.bf16.msra.mxu0 %v903_v29 }
 0x262   :  { %v601_v23 = vadd.f32 1e-10, %v600_v22 }
 0x264   :  { %906 = vlog2.f32 %v601_v23 }
 0x271   :  { %v907_v24 = vpop.eup %906 }
 0x272   :  { %v603_v25 = vmul.f32 0.6931472, %v907_v24 }
 0x274   :  { %v604_v26 = vmul.f32 %v603_v25, %v600_v22 }
 0x276   :  { %v606_v27 = vsel %vm605_vm4, %v604_v26, 0.0 }
 0x277   :  { %607 = vadd.xlane.f32.xlu1 %v606_v27 }
 0x303   :  { %v852_v30 = vpop.f32.mrf.mxu0 }
 0x304   :  { %v407_v32 = vsub.f32 %v852_v30, %v1078_v40  ;;  %v608_v40 = vpop.xlane.xlu1 %607 }
 0x305   :  { %v387_v31 = vpop.f32.mrf.mxu0 }
 0x306   :  { %v406_v34 = vsub.f32 %v387_v31, %v1073_v33  ;;  %v442_v35 = vpack.c.bf16 %v852_v30, %v387_v31  ;;  %v412_v39 = vmul.f32 %v407_v32, %v407_v32  ;;  %v609_v33 = vrot.slane %v608_v40, 4 }
 0x307   :  { %v855_v36 = vpop.f32.mrf.mxu0 }
 0x308   :  { %v411_v37 = vmul.f32 %v406_v34, %v406_v34  ;;  %872 = vmatprep.mubr.bf16.mxu0 %v442_v35  ;;  %v409_v43 = vsub.f32 %v855_v36, %v1084_v42  ;;  %v610_v51 = vadd.f32 %v609_v33, %v608_v40 }
 0x309   :  { %v397_v38 = vpop.f32.mrf.mxu0 }
 0x30a   :  { %v408_v44 = vsub.f32 %v397_v38, %v1080_v41  ;;  %v443_v45 = vpack.c.bf16 %v855_v36, %v397_v38  ;;  %v415_v47 = vadd.f32 %v412_v39, %v411_v37  ;;  %v414_v48 = vmul.f32 %v409_v43, %v409_v43 }
 0x30b   :  { %v611_v52 = vrot.slane %v610_v51, 2 }
 0x30c   :  { %v413_v46 = vmul.f32 %v408_v44, %v408_v44  ;;  %873 = vmatmul.mubr.bf16.vlgmr.msra.gmra.mxu0 %v443_v45 }
 0x30d   :  { %v612_v56 = vadd.f32 %v611_v52, %v610_v51 }
 0x30e   :  { %v416_v49 = vadd.f32 %v415_v47, %v413_v46 }
 0x30f   :  { %v613_v58 = vrot.slane %v612_v56, 1 }
 0x310   :  { %v417_v50 = vadd.f32 %v416_v49, %v414_v48 }
 0x311   :  { %v614_v60 = vadd.f32 %v613_v58, %v612_v56 }
 0x312   :  { %418 = vadd.xlane.f32.xlu0 %v417_v50 }
 0x39b   :  { %v419_v53 = vpop.xlane.xlu0 %418 }
 0x39c   :  { %v420_v54 = vrot.slane %v419_v53, 4 }
 0x39e   :  { %v421_v55 = vadd.f32 %v420_v54, %v419_v53 }
 0x3a0   :  { %v422_v57 = vrot.slane %v421_v55, 2 }
 0x3a2   :  { %v423_v42 = vadd.f32 %v422_v57, %v421_v55 }
 0x3a4   :  { %v424_v41 = vrot.slane %v423_v42, 1 }
 0x3a6   :  { %v425_v59 = vadd.f32 %v424_v41, %v423_v42 }
 0x3a8   :  { %876 = vpush %v425_v59 }
 0x3a9   :  { %878 = vpush %v614_v60 }
 0x3cc   :  { %v874_v62 = vpop.f32.mrf.mxu0 }
 0x3cd   :  { %v558_v63 = vadd.f32 %v874_v62, %v672_v61 }
 0x3ce   :  { %v549_v0 = vpop.f32.mrf.mxu0 }
 0x3cf   :  { %v550_v1 = vadd.f32 %v672_v61, %v549_v0  ;;  %v566_v3 = vadd.f32 %v558_v63, %v397_v38 }
 0x3d0   :  { %v875_v2 = vpop.f32.mrf.mxu0 }
 0x3d1   :  { %v561_v4 = vadd.f32 %v875_v2, %v672_v61  ;;  %v564_v6 = vadd.f32 %v550_v1, %v387_v31  ;;  %v570_v9 = vmax.f32 %v566_v3, 0.0 }
 0x3d2   :  { %v552_v5 = vpop.f32.mrf.mxu0 }
 0x3d3   :  { %v567_v7 = vadd.f32 %v855_v36, %v561_v4  ;;  %v553_v8 = vadd.f32 %v672_v61, %v552_v5  ;;  %v568_v12 = vmax.f32 %v564_v6, 0.0 }
 0x3d5   :  { %v571_v10 = vmax.f32 %v567_v7, 0.0  ;;  %v565_v11 = vadd.f32 %v852_v30, %v553_v8 }
 0x3d7   :  { %v697_v13 = vpack.c.bf16 %v571_v10, %v570_v9  ;;  %v569_v14 = vmax.f32 %v565_v11, 0.0 }
 0x3d9   :  { %699 = vst [vmem:[%s1140_s7 + $0x8] sm:$0xff] %v697_v13   ;;  %v692_v15 = vpack.c.bf16 %v569_v14, %v568_v12  ;;  %s877_s6 = spop %876 }
 0x3da   :  { %s596_s14 = smul.f32 0.0009765625, %s877_s6  ;;  %s879_s15 = spop %878 }
 0x3db   :  { %693 = vst [vmem:[%s1140_s7] sm:$0xff] %v692_v15   ;;  %s616_s18 = ssub.f32 0.0, %s879_s15 }
 0x3dc   :  { %598 = sst [smem:[#allocation4]] %s596_s14 }
 0x3dd   :  { %v617_v16 = vstv %s616_s18  ;;  %632 = dma.smem_to_hbm %s932_s2, 16, %s1141_s8, [#allocation5]  }
 0x3de   :  { %v618_v17 = vmul.f32 1.442695, %v617_v16 }
 0x3e0   :  { %908 = vpow2.f32 %v618_v17 }
 0x3ed   :  { %v909_v18 = vpop.eup %908 }
 0x3ee   :  { %880 = vpush %v909_v18 }
 0x41f   :  { %s881_s20 = spop %880 }
 0x420   :  { %622 = sst [smem:[#allocation6]] %s881_s20 }
 0x421   :  { %640 = dma.smem_to_hbm %s933_s4, 16, %s1142_s9, [#allocation7]  }
 0x422   :  { %926 = dma.done.wait [#allocation5], 16  }
 0x423   :  { %927 = vsyncadd [#allocation5], 4294967280 }
 0x424   :  { %928 = dma.done.wait [#allocation7], 16  }
 0x425   :  { %929 = vsyncadd [#allocation7], 4294967280 }
 0x426   :  { %649 = sfence }
 0x427   :  { %650 = vsyncpa [#allocation5], 1 }
 0x428   :  { %651 = vsyncpa [#allocation7], 1 }

// kernel: vqvae_forward.9
= control target key start
LH: loop header
LB: loop body
LE: loop exit
PB: predicated region body
PF: predicated region fallthrough
CT: control target
= control target key end

     0   :  { %s1667_s1 = inlined_call_operand.vmem [shape: bf16[1152,128], index: 1, kind: input, shape index: {}]   ;;  %s1668_s0 = inlined_call_operand.vmem [shape: bf16[32,1152], index: 0, kind: input, shape index: {}]   ;;  %s1669_s2 = inlined_call_operand.vmem [shape: f32[1,128], index: 2, kind: input, shape index: {}]   ;;  %s1670_s3 = inlined_call_operand.vmem [shape: bf16[32,128], index: 3, kind: input, shape index: {}]   ;;  %s1671_s4 = inlined_call_operand.vmem [shape: bf16[32,128], index: 4, kind: output, shape index: {}]  }
   0x1   :  { %v1259_v0 = vld [vmem:[%s1667_s1 + $0x78] sm:$0xff]   ;;  %v1263_v4 = vld [vmem:[%s1667_s1 + $0x70] sm:$0xff]   ;;  %v1267_v8 = vld [vmem:[%s1667_s1 + $0x68] sm:$0xff]  }
   0x2   :  { %v1260_v1 = vld [vmem:[%s1667_s1 + $0x38] sm:$0xff]   ;;  %1117 = vmatprep.subr.bf16.mxu0 %v1259_v0  ;;  %v1264_v5 = vld [vmem:[%s1667_s1 + $0x30] sm:$0xff]   ;;  %v1268_v9 = vld [vmem:[%s1667_s1 + $0x28] sm:$0xff]  }
   0x3   :  { %v1261_v2 = vld [vmem:[%s1667_s1 + $0xf8] sm:$0xff]   ;;  %1118 = vmatpush3.bf16.msra.mxu0 %v1260_v1  ;;  %v1265_v6 = vld [vmem:[%s1667_s1 + $0xf0] sm:$0xff]   ;;  %v1269_v10 = vld [vmem:[%s1667_s1 + $0xe8] sm:$0xff]  }
   0x4   :  { %v1262_v3 = vld [vmem:[%s1667_s1 + $0xb8] sm:$0xff]   ;;  %1145 = vmatprep.subr.bf16.mxu1 %v1261_v2  ;;  %1119 = vmatprep.subr.bf16.mxu0 %v1263_v4  ;;  %v1266_v7 = vld [vmem:[%s1667_s1 + $0xb0] sm:$0xff]   ;;  %v1270_v11 = vld [vmem:[%s1667_s1 + $0xa8] sm:$0xff]  }
   0x5   :  { %1146 = vmatpush3.bf16.msra.mxu1 %v1262_v3  ;;  %v1271_v12 = vld [vmem:[%s1667_s1 + $0x60] sm:$0xff]   ;;  %v1275_v16 = vld [vmem:[%s1667_s1 + $0x58] sm:$0xff]   ;;  %v1279_v20 = vld [vmem:[%s1667_s1 + $0x50] sm:$0xff]  }
   0x6   :  { %1147 = vmatprep.subr.bf16.mxu1 %v1265_v6  ;;  %v1272_v13 = vld [vmem:[%s1667_s1 + $0x20] sm:$0xff]   ;;  %v1276_v17 = vld [vmem:[%s1667_s1 + $0x18] sm:$0xff]   ;;  %v1280_v21 = vld [vmem:[%s1667_s1 + $0x10] sm:$0xff]  }
   0x7   :  { %1120 = vmatpush3.bf16.msra.mxu0 %v1264_v5  ;;  %v1273_v14 = vld [vmem:[%s1667_s1 + $0xe0] sm:$0xff]   ;;  %v1277_v18 = vld [vmem:[%s1667_s1 + $0xd8] sm:$0xff]   ;;  %v1281_v22 = vld [vmem:[%s1667_s1 + $0xd0] sm:$0xff]  }
   0x8   :  { %1121 = vmatprep.subr.bf16.mxu0 %v1267_v8  ;;  %v1274_v15 = vld [vmem:[%s1667_s1 + $0xa0] sm:$0xff]   ;;  %v1278_v19 = vld [vmem:[%s1667_s1 + $0x98] sm:$0xff]   ;;  %v1282_v23 = vld [vmem:[%s1667_s1 + $0x90] sm:$0xff]  }
   0x9   :  { %1148 = vmatpush3.bf16.msra.mxu1 %v1266_v7  ;;  %v1283_v24 = vld [vmem:[%s1667_s1 + $0x48] sm:$0xff]   ;;  %v1287_v28 = vld [vmem:[%s1667_s1 + $0x40] sm:$0xff]   ;;  %v1294_v34 = vld [vmem:[%s1667_s1 + $0x178] sm:$0xff]  }
   0xa   :  { %1149 = vmatprep.subr.bf16.mxu1 %v1269_v10  ;;  %v1284_v25 = vld [vmem:[%s1667_s1 + $0x8] sm:$0xff]   ;;  %v1288_v29 = vld [vmem:[%s1667_s1] sm:$0xff]   ;;  %v1298_v37 = vld [vmem:[%s1667_s1 + $0x138] sm:$0xff]  }
   0xb   :  { %1122 = vmatpush3.bf16.msra.mxu0 %v1268_v9  ;;  %v1285_v26 = vld [vmem:[%s1667_s1 + $0xc8] sm:$0xff]   ;;  %v1289_v30 = vld [vmem:[%s1667_s1 + $0xc0] sm:$0xff]   ;;  %v1299_v38 = vld [vmem:[%s1667_s1 + $0x1f8] sm:$0xff]  }
   0xc   :  { %1123 = vmatprep.subr.bf16.mxu0 %v1271_v12  ;;  %v1286_v27 = vld [vmem:[%s1667_s1 + $0x88] sm:$0xff]   ;;  %v1290_v31 = vld [vmem:[%s1668_s0] ss:$36 sps:$4 sm:$0xff]   ;;  %v1300_v39 = vld [vmem:[%s1667_s1 + $0x1b8] sm:$0xff]  }
   0xd   :  { %1150 = vmatpush3.bf16.msra.mxu1 %v1270_v11  ;;  %v1292_v32 = vld [vmem:[%s1668_s0 + $0x4] ss:$36 sps:$4 sm:$0xff]   ;;  %v1297_v36 = vld [vmem:[%s1668_s0 + $0xc] ss:$36 sps:$4 sm:$0xff]   ;;  %v1313_v52 = vld [vmem:[%s1667_s1 + $0x158] sm:$0xff]  }
   0xe   :  { %1151 = vmatprep.subr.bf16.mxu1 %v1273_v14  ;;  %v1293_v33 = vld [vmem:[%s1667_s1 + $0x80] sm:$0xff]   ;;  %745 = vmatprep.mubr.bf16.mxu0 %v1292_v32  ;;  %v1295_v35 = vld [vmem:[%s1668_s0 + $0x8] ss:$36 sps:$4 sm:$0xff]   ;;  %v1301_v40 = vld [vmem:[%s1667_s1 + $0x170] sm:$0xff]  }
   0xf   :  { %1124 = vmatpush3.bf16.msra.mxu0 %v1272_v13  ;;  %794 = vmatprep.mubr.bf16.mxu1 %v1297_v36  ;;  %v1302_v41 = vld [vmem:[%s1667_s1 + $0x130] sm:$0xff]   ;;  %v1305_v44 = vld [vmem:[%s1667_s1 + $0x168] sm:$0xff]   ;;  %v1309_v48 = vld [vmem:[%s1667_s1 + $0x160] sm:$0xff]  }
  0x10   :  { %1125 = vmatprep.subr.bf16.mxu0 %v1275_v16  ;;  %v1303_v42 = vld [vmem:[%s1667_s1 + $0x1f0] sm:$0xff]   ;;  %v1306_v45 = vld [vmem:[%s1667_s1 + $0x128] sm:$0xff]   ;;  %v1310_v49 = vld [vmem:[%s1667_s1 + $0x120] sm:$0xff]  }
  0x11   :  { %1152 = vmatpush3.bf16.msra.mxu1 %v1274_v15  ;;  %v1304_v43 = vld [vmem:[%s1667_s1 + $0x1b0] sm:$0xff]   ;;  %v1307_v46 = vld [vmem:[%s1667_s1 + $0x1e8] sm:$0xff]   ;;  %v1311_v50 = vld [vmem:[%s1667_s1 + $0x1e0] sm:$0xff]  }
  0x12   :  { %1153 = vmatprep.subr.bf16.mxu1 %v1277_v18  ;;  %v1308_v47 = vld [vmem:[%s1667_s1 + $0x1a8] sm:$0xff]   ;;  %v1312_v51 = vld [vmem:[%s1667_s1 + $0x1a0] sm:$0xff]   ;;  %v1314_v53 = vld [vmem:[%s1667_s1 + $0x118] sm:$0xff]  }
  0x13   :  { %1126 = vmatpush3.bf16.msra.mxu0 %v1276_v17  ;;  %v1315_v54 = vld [vmem:[%s1668_s0 + $0x4c] ss:$36 sps:$4 sm:$0xff]   ;;  %v1317_v55 = vld [vmem:[%s1667_s1 + $0x1d8] sm:$0xff]   ;;  %v1331_v4 = vld [vmem:[%s1667_s1 + $0x140] sm:$0xff]  }
  0x14   :  { %1127 = vmatprep.subr.bf16.mxu0 %v1279_v20  ;;  %v1318_v56 = vld [vmem:[%s1668_s0 + $0x48] ss:$36 sps:$4 sm:$0xff]   ;;  %v1319_v57 = vld [vmem:[%s1667_s1 + $0x198] sm:$0xff]   ;;  %v1322_v59 = vld [vmem:[%s1667_s1 + $0x150] sm:$0xff]  }
  0x15   :  { %1154 = vmatpush3.bf16.msra.mxu1 %v1278_v19  ;;  %v1320_v58 = vld [vmem:[%s1668_s0 + $0x54] ss:$36 sps:$4 sm:$0xff]   ;;  %v1327_v0 = vld [vmem:[%s1667_s1 + $0x148] sm:$0xff]   ;;  %v1332_v5 = vld [vmem:[%s1667_s1 + $0x100] sm:$0xff]  }
  0x16   :  { %1155 = vmatprep.subr.bf16.mxu1 %v1281_v22  ;;  %v1323_v60 = vld [vmem:[%s1668_s0 + $0x50] ss:$36 sps:$4 sm:$0xff]   ;;  %v1328_v1 = vld [vmem:[%s1667_s1 + $0x108] sm:$0xff]   ;;  %v1333_v6 = vld [vmem:[%s1667_s1 + $0x1c0] sm:$0xff]  }
  0x17   :  { %1128 = vmatpush3.bf16.msra.mxu0 %v1280_v21  ;;  %v1324_v61 = vld [vmem:[%s1667_s1 + $0x110] sm:$0xff]   ;;  %v1329_v2 = vld [vmem:[%s1667_s1 + $0x1c8] sm:$0xff]   ;;  %v1337_v9 = vld [vmem:[%s1667_s1 + $0x180] sm:$0xff]  }
  0x18   :  { %1129 = vmatprep.subr.bf16.mxu0 %v1283_v24  ;;  %v1325_v62 = vld [vmem:[%s1667_s1 + $0x1d0] sm:$0xff]   ;;  %v1330_v3 = vld [vmem:[%s1667_s1 + $0x188] sm:$0xff]   ;;  %v1338_v10 = vld [vmem:[%s1667_s1 + $0x238] sm:$0xff]  }
  0x19   :  { %1156 = vmatpush3.bf16.msra.mxu1 %v1282_v23  ;;  %v1326_v63 = vld [vmem:[%s1667_s1 + $0x190] sm:$0xff]   ;;  %v1339_v11 = vld [vmem:[%s1668_s0 + $0x18] ss:$36 sps:$4 sm:$0xff]   ;;  %v1346_v16 = vld [vmem:[%s1667_s1 + $0x228] sm:$0xff]  }
  0x1a   :  { %1157 = vmatprep.subr.bf16.mxu1 %v1285_v26  ;;  %v1334_v7 = vld [vmem:[%s1668_s0 + $0x10] ss:$36 sps:$4 sm:$0xff]   ;;  %v1341_v12 = vld [vmem:[%s1668_s0 + $0x1c] ss:$36 sps:$4 sm:$0xff]   ;;  %v1347_v17 = vld [vmem:[%s1668_s0 + $0x64] ss:$36 sps:$4 sm:$0xff]  }
  0x1b   :  { %1130 = vmatpush3.bf16.msra.mxu0 %v1284_v25  ;;  %v1336_v8 = vld [vmem:[%s1668_s0 + $0x14] ss:$36 sps:$4 sm:$0xff]   ;;  %v1343_v14 = vld [vmem:[%s1668_s0 + $0x5c] ss:$36 sps:$4 sm:$0xff]   ;;  %v1353_v23 = vld [vmem:[%s1667_s1 + $0x208] sm:$0xff]  }
  0x1c   :  { %1131 = vmatprep.subr.bf16.mxu0 %v1287_v28  ;;  %v1342_v13 = vld [vmem:[%s1667_s1 + $0x230] sm:$0xff]   ;;  %v1345_v15 = vld [vmem:[%s1668_s0 + $0x58] ss:$36 sps:$4 sm:$0xff]   ;;  %v1349_v18 = vld [vmem:[%s1668_s0 + $0x60] ss:$36 sps:$4 sm:$0xff]  }
  0x1d   :  { %1158 = vmatpush3.bf16.msra.mxu1 %v1286_v27  ;;  %v1350_v19 = vld [vmem:[%s1667_s1 + $0x220] sm:$0xff]   ;;  %v1351_v20 = vld [vmem:[%s1667_s1 + $0x218] sm:$0xff]   ;;  %v1352_v22 = vld [vmem:[%s1667_s1 + $0x210] sm:$0xff]  }
  0x1e   :  { %1159 = vmatprep.subr.bf16.mxu1 %v1289_v30  ;;  %v1355_v21 = vld [vmem:[%s1668_s0 + $0x20] ss:$36 sps:$4 sm:$0xff]   ;;  %v1356_v25 = vld [vmem:[%s1668_s0 + $0x68] ss:$36 sps:$4 sm:$0xff]  }
  0x1f   :  { %1132 = vmatpush3.bf16.msra.mxu0 %v1288_v29  ;;  %v1354_v24 = vld [vmem:[%s1667_s1 + $0x200] sm:$0xff]  }
  0x20   :  { %1173 = vmatprep.subr.bf16.mxu0 %v1294_v34 }
  0x21   :  { %1160 = vmatpush3.bf16.msra.mxu1 %v1293_v33 }
  0x22   :  { %746 = vmatmul.mubr.bf16.vlgmr.msra.gmra.mxu0 %v1290_v31  ;;  %1201 = vmatprep.subr.bf16.mxu1 %v1299_v38 }
  0x23   :  { %1174 = vmatpush3.bf16.msra.mxu0 %v1298_v37  ;;  %753 = vmatprep.mubr.bf16.mxu0 %v1315_v54 }
  0x24   :  { %795 = vmatmul.mubr.bf16.vlgmr.msra.gmra.mxu1 %v1295_v35  ;;  %1175 = vmatprep.subr.bf16.mxu0 %v1301_v40 }
  0x25   :  { %1202 = vmatpush3.bf16.msra.mxu1 %v1300_v39  ;;  %802 = vmatprep.mubr.bf16.mxu1 %v1320_v58 }
  0x26   :  { %1203 = vmatprep.subr.bf16.mxu1 %v1303_v42 }
  0x27   :  { %1176 = vmatpush3.bf16.msra.mxu0 %v1302_v41 }
  0x28   :  { %1177 = vmatprep.subr.bf16.mxu0 %v1305_v44 }
  0x29   :  { %1204 = vmatpush3.bf16.msra.mxu1 %v1304_v43 }
  0x2a   :  { %1205 = vmatprep.subr.bf16.mxu1 %v1307_v46  ;;  %754 = vmatmul.mubr.bf16.gmra.mxu0 %v1318_v56 }
  0x2b   :  { %1178 = vmatpush3.bf16.msra.mxu0 %v1306_v45  ;;  %843 = vmatprep.mubr.bf16.mxu0 %v1336_v8 }
  0x2c   :  { %1179 = vmatprep.subr.bf16.mxu0 %v1309_v48  ;;  %803 = vmatmul.mubr.bf16.gmra.mxu1 %v1323_v60 }
  0x2d   :  { %1206 = vmatpush3.bf16.msra.mxu1 %v1308_v47  ;;  %892 = vmatprep.mubr.bf16.mxu1 %v1341_v12 }
  0x2e   :  { %1207 = vmatprep.subr.bf16.mxu1 %v1311_v50 }
  0x2f   :  { %1180 = vmatpush3.bf16.msra.mxu0 %v1310_v49 }
  0x30   :  { %1181 = vmatprep.subr.bf16.mxu0 %v1313_v52 }
  0x31   :  { %1208 = vmatpush3.bf16.msra.mxu1 %v1312_v51 }
  0x32   :  { %1209 = vmatprep.subr.bf16.mxu1 %v1317_v55  ;;  %v998_v55 = vld [vmem:[%s1669_s2] ss:$0 sm:$0xff] }
  0x33   :  { %1182 = vmatpush3.bf16.msra.mxu0 %v1314_v53 }
  0x34   :  { %1183 = vmatprep.subr.bf16.mxu0 %v1322_v59 }
  0x35   :  { %1210 = vmatpush3.bf16.msra.mxu1 %v1319_v57 }
  0x36   :  { %1211 = vmatprep.subr.bf16.mxu1 %v1325_v62 }
  0x37   :  { %1184 = vmatpush3.bf16.msra.mxu0 %v1324_v61 }
  0x38   :  { %1185 = vmatprep.subr.bf16.mxu0 %v1327_v0 }
  0x39   :  { %1212 = vmatpush3.bf16.msra.mxu1 %v1326_v63 }
  0x3a   :  { %1213 = vmatprep.subr.bf16.mxu1 %v1329_v2 }
  0x3b   :  { %1186 = vmatpush3.bf16.msra.mxu0 %v1328_v1 }
  0x3c   :  { %1187 = vmatprep.subr.bf16.mxu0 %v1331_v4 }
  0x3d   :  { %1214 = vmatpush3.bf16.msra.mxu1 %v1330_v3 }
  0x3e   :  { %1215 = vmatprep.subr.bf16.mxu1 %v1333_v6 }
  0x3f   :  { %1188 = vmatpush3.bf16.msra.mxu0 %v1332_v5 }
  0x40   :  { %1239 = vmatprep.subr.bf16.mxu0 %v1338_v10 }
  0x41   :  { %1216 = vmatpush3.bf16.msra.mxu1 %v1337_v9 }
  0x42   :  { %844 = vmatmul.mubr.bf16.vlgmr.msra.gmra.mxu0 %v1334_v7 }
  0x43   :  { %1240 = vmatpush3.bf16.msra.mxu0 %v1338_v10  ;;  %851 = vmatprep.mubr.bf16.mxu0 %v1343_v14 }
  0x44   :  { %893 = vmatmul.mubr.bf16.vlgmr.msra.gmra.mxu1 %v1339_v11  ;;  %1241 = vmatprep.subr.bf16.mxu0 %v1342_v13 }
  0x45   :  { %900 = vmatprep.mubr.bf16.mxu1 %v1347_v17 }
  0x47   :  { %1242 = vmatpush3.bf16.msra.mxu0 %v1342_v13 }
  0x48   :  { %1243 = vmatprep.subr.bf16.mxu0 %v1346_v16 }
  0x4a   :  { %852 = vmatmul.mubr.bf16.gmra.mxu0 %v1345_v15 }
  0x4b   :  { %1244 = vmatpush3.bf16.msra.mxu0 %v1346_v16  ;;  %1255 = vmatprep.mubr.bf16.mxu0 %v1355_v21 }
  0x4c   :  { %901 = vmatmul.mubr.bf16.gmra.mxu1 %v1349_v18  ;;  %1245 = vmatprep.subr.bf16.mxu0 %v1350_v19  ;;  %v1115_v18 = vld [vmem:[%s1670_s3 + $0x8] sm:$0xff]  }
  0x4f   :  { %1246 = vmatpush3.bf16.msra.mxu0 %v1350_v19 }
  0x50   :  { %1247 = vmatprep.subr.bf16.mxu0 %v1351_v20 }
  0x53   :  { %1248 = vmatpush3.bf16.msra.mxu0 %v1351_v20 }
  0x54   :  { %1249 = vmatprep.subr.bf16.mxu0 %v1352_v22 }
  0x57   :  { %1250 = vmatpush3.bf16.msra.mxu0 %v1352_v22 }
  0x58   :  { %1251 = vmatprep.subr.bf16.mxu0 %v1353_v23 }
  0x5b   :  { %1252 = vmatpush3.bf16.msra.mxu0 %v1353_v23 }
  0x5c   :  { %1253 = vmatprep.subr.bf16.mxu0 %v1354_v24 }
  0x5f   :  { %1254 = vmatpush3.bf16.msra.mxu0 %v1354_v24  ;;  %v1103_v24 = vunpack.c.l.bf16 %v1115_v18 }
  0x62   :  { %1256 = vmatmul.mubr.bf16.vlgmr.msra.gmra.mxu0 %v1356_v25  ;;  %v1098_v25 = vld [vmem:[%s1670_s3] sm:$0xff]  }
  0xe2   :  { %v1133_v26 = vpop.f32.mrf.mxu0 }
  0xe4   :  { %v1161_v27 = vpop.f32.mrf.mxu1  ;;  %v1134_v28 = vpop.f32.mrf.mxu0 }
  0xe5   :  { %v1135_v54 = vadd.f32 %v1134_v28, %v1133_v26 }
  0xe6   :  { %v1162_v29 = vpop.f32.mrf.mxu1  ;;  %v1136_v30 = vpop.f32.mrf.mxu0 }
  0xe7   :  { %v748_v61 = vadd.f32 %v1135_v54, %v998_v55  ;;  %v1163_v62 = vadd.f32 %v1162_v29, %v1161_v27 }
  0xe8   :  { %v1164_v31 = vpop.f32.mrf.mxu1  ;;  %v1137_v32 = vpop.f32.mrf.mxu0 }
  0xe9   :  { %v1138_v63 = vadd.f32 %v1137_v32, %v1136_v30  ;;  %v797_v7 = vadd.f32 %v1163_v62, %v748_v61  ;;  %v1099_v32 = vunpack.c.l.bf16 %v1098_v25 }
  0xea   :  { %v1139_v33 = vpop.f32.mrf.mxu0  ;;  %v1165_v34 = vpop.f32.mrf.mxu1 }
  0xeb   :  { %v751_v8 = vadd.f32 %v1138_v63, %v998_v55  ;;  %v1166_v9 = vadd.f32 %v1165_v34, %v1164_v31  ;;  %v1104_v34 = vunpack.c.h.bf16 %v1115_v18 }
  0xec   :  { %v1167_v35 = vpop.f32.mrf.mxu1  ;;  %v1140_v36 = vpop.f32.mrf.mxu0 }
  0xed   :  { %v1141_v53 = vadd.f32 %v1140_v36, %v1139_v33  ;;  %v800_v19 = vadd.f32 %v1166_v9, %v751_v8 }
  0xee   :  { %v1168_v37 = vpop.f32.mrf.mxu1  ;;  %v1142_v38 = vpop.f32.mrf.mxu0 }
  0xef   :  { %v756_v58 = vadd.f32 %v1141_v53, %v998_v55  ;;  %v1169_v59 = vadd.f32 %v1168_v37, %v1167_v35 }
  0xf0   :  { %v1170_v39 = vpop.f32.mrf.mxu1  ;;  %v1143_v40 = vpop.f32.mrf.mxu0 }
  0xf1   :  { %v1144_v60 = vadd.f32 %v1143_v40, %v1142_v38  ;;  %v805_v3 = vadd.f32 %v1169_v59, %v756_v58 }
  0xf2   :  { %v1171_v42 = vpop.f32.mrf.mxu1 }
  0xf3   :  { %v759_v4 = vadd.f32 %v1144_v60, %v998_v55  ;;  %v1172_v5 = vadd.f32 %v1171_v42, %v1170_v39  ;;  %v1100_v39 = vunpack.c.h.bf16 %v1098_v25 }
  0xf5   :  { %v808_v14 = vadd.f32 %v1172_v5, %v759_v4 }
 0x102   :  { %v1189_v41 = vpop.f32.mrf.mxu0 }
 0x104   :  { %v1190_v43 = vpop.f32.mrf.mxu0  ;;  %v1217_v44 = vpop.f32.mrf.mxu1 }
 0x105   :  { %v1191_v6 = vadd.f32 %v1190_v43, %v1189_v41 }
 0x106   :  { %v1192_v45 = vpop.f32.mrf.mxu0  ;;  %v1218_v46 = vpop.f32.mrf.mxu1 }
 0x107   :  { %v846_v15 = vadd.f32 %v1191_v6, %v797_v7  ;;  %v1219_v16 = vadd.f32 %v1218_v46, %v1217_v44 }
 0x108   :  { %v1193_v47 = vpop.f32.mrf.mxu0  ;;  %v1220_v48 = vpop.f32.mrf.mxu1 }
 0x109   :  { %v1194_v17 = vadd.f32 %v1193_v47, %v1192_v45  ;;  %v895_v29 = vadd.f32 %v1219_v16, %v846_v15 }
 0x10a   :  { %v1195_v49 = vpop.f32.mrf.mxu0  ;;  %v1221_v50 = vpop.f32.mrf.mxu1 }
 0x10b   :  { %v849_v26 = vadd.f32 %v1194_v17, %v800_v19  ;;  %v1222_v27 = vadd.f32 %v1221_v50, %v1220_v48 }
 0x10c   :  { %v1196_v51 = vpop.f32.mrf.mxu0  ;;  %v1223_v52 = vpop.f32.mrf.mxu1 }
 0x10d   :  { %v1197_v0 = vadd.f32 %v1196_v51, %v1195_v49  ;;  %v898_v38 = vadd.f32 %v1222_v27, %v849_v26 }
 0x10e   :  { %v1198_v56 = vpop.f32.mrf.mxu0  ;;  %v1224_v57 = vpop.f32.mrf.mxu1 }
 0x10f   :  { %v854_v10 = vadd.f32 %v1197_v0, %v805_v3  ;;  %v1225_v11 = vadd.f32 %v1224_v57, %v1223_v52 }
 0x110   :  { %v1199_v1 = vpop.f32.mrf.mxu0  ;;  %v1226_v2 = vpop.f32.mrf.mxu1 }
 0x111   :  { %v1200_v12 = vadd.f32 %v1199_v1, %v1198_v56  ;;  %v903_v22 = vadd.f32 %v1225_v11, %v854_v10 }
 0x112   :  { %v1227_v13 = vpop.f32.mrf.mxu1 }
 0x113   :  { %v857_v20 = vadd.f32 %v1200_v12, %v808_v14  ;;  %v1228_v21 = vadd.f32 %v1227_v13, %v1226_v2 }
 0x115   :  { %v906_v33 = vadd.f32 %v1228_v21, %v857_v20 }
 0x122   :  { %v1257_v23 = vpop.f32.mrf.mxu0 }
 0x123   :  { %v952_v28 = vadd.f32 %v1257_v23, %v903_v22 }
 0x124   :  { %v943_v30 = vpop.f32.mrf.mxu0 }
 0x125   :  { %v944_v31 = vadd.f32 %v943_v30, %v895_v29  ;;  %v968_v36 = vadd.f32 %v1103_v24, %v952_v28 }
 0x126   :  { %v1258_v35 = vpop.f32.mrf.mxu0 }
 0x127   :  { %v955_v37 = vadd.f32 %v1258_v35, %v906_v33  ;;  %v966_v41 = vadd.f32 %v1099_v32, %v944_v31  ;;  %v972_v44 = vmax.f32 %v968_v36, 0.0 }
 0x128   :  { %v946_v40 = vpop.f32.mrf.mxu0 }
 0x129   :  { %v969_v42 = vadd.f32 %v1104_v34, %v955_v37  ;;  %v947_v43 = vadd.f32 %v946_v40, %v898_v38  ;;  %v970_v47 = vmax.f32 %v966_v41, 0.0 }
 0x12b   :  { %v973_v45 = vmax.f32 %v969_v42, 0.0  ;;  %v967_v46 = vadd.f32 %v1100_v39, %v947_v43 }
 0x12d   :  { %v1113_v48 = vpack.c.bf16 %v973_v45, %v972_v44  ;;  %v971_v49 = vmax.f32 %v967_v46, 0.0 }
 0x12f   :  { %1116 = vst [vmem:[%s1671_s4 + $0x8] sm:$0xff] %v1113_v48   ;;  %v1108_v50 = vpack.c.bf16 %v971_v49, %v970_v47 }
 0x131   :  { %1109 = vst [vmem:[%s1671_s4] sm:$0xff] %v1108_v50  }

// kernel: vqvae_forward.13
= control target key start
LH: loop header
LB: loop body
LE: loop exit
PB: predicated region body
PF: predicated region fallthrough
CT: control target
= control target key end

     0   :  { %s674_s12 = smov 0   ;;  %s798_s0 = inlined_call_operand.vmem [shape: bf16[16,8,128], index: 0, kind: input, shape index: {}]   ;;  %s799_s1 = inlined_call_operand.vmem [shape: bf16[128,512], index: 1, kind: input, shape index: {}]   ;;  %s800_s2 = inlined_call_operand.vmem [shape: f32[1,512], index: 2, kind: input, shape index: {}]   ;;  %s801_s3 = inlined_call_operand.vmem [shape: bf16[16,2,8,256], index: 3, kind: output, shape index: {}]  }
   0x1 LB: > { %s540_s13 = sadd.s32 4294967295, %s651_s12   ;;  %p544_p0 = scmp.ge.s32.totalorder %s651_s12, 1  ;;  %s651_s12 = sphi %s674_s12, %s13_s12  }
   0x2   : > { %p136_p1 = scmp.lt.s32.totalorder %s651_s12, 17 }
   0x4   : > { %p137_p2 = pnand %p544_p0, %p136_p1 }
   0x5   : > { %p159_p3 = scmp.lt.s32.totalorder (!%p137_p2), %s540_s13, 15 }
   0x6   : > { %140 = sbr.rel (%p137_p2) target bundleno = 245 (0xf5), region = 32 }
   0xb   : > { %v597_v0 = vld [vmem:[%s799_s1 + $0xe4] ss:$16 sps:$4 sm:$0xff]   ;;  %v599_v1 = vld [vmem:[%s799_s1 + $0xec] ss:$16 sps:$4 sm:$0xff]   ;;  %v653_v2 = vmov 0   ;;  %s803_s13 = smov (!%p159_p3, %s540_s13), 15  ;;  %v204_v34 = vlaneseq }
   0xc   : > { %416 = vmatprep.mubr.bf16.mxu0 %v653_v2  ;;  %457 = vmatprep.mubr.bf16.mxu1 %v653_v2  ;;  %v601_v3 = vld [vmem:[%s799_s1 + $0xe0] ss:$16 sps:$4 sm:$0xff]   ;;  %v602_v4 = vld [vmem:[%s799_s1 + $0xe8] ss:$16 sps:$4 sm:$0xff]   ;;  %v603_v5 = vld [vmem:[%s799_s1 + $0xc4] ss:$16 sps:$4 sm:$0xff]  }
   0xd   : > { %384 = vmatprep.subr.bf16.mxu0 %v597_v0  ;;  %425 = vmatprep.subr.bf16.mxu1 %v599_v1  ;;  %v605_v6 = vld [vmem:[%s799_s1 + $0xcc] ss:$16 sps:$4 sm:$0xff]   ;;  %v607_v7 = vld [vmem:[%s799_s1 + $0xc0] ss:$16 sps:$4 sm:$0xff]   ;;  %v608_v8 = vld [vmem:[%s799_s1 + $0xc8] ss:$16 sps:$4 sm:$0xff]  }
   0xe   : > { %385 = vmatpush1.bf16.msra.mxu0 %v601_v3  ;;  %426 = vmatpush1.bf16.msra.mxu1 %v602_v4  ;;  %v609_v9 = vld [vmem:[%s799_s1 + $0xa4] ss:$16 sps:$4 sm:$0xff]   ;;  %v611_v10 = vld [vmem:[%s799_s1 + $0xac] ss:$16 sps:$4 sm:$0xff]   ;;  %v613_v11 = vld [vmem:[%s799_s1 + $0xa0] ss:$16 sps:$4 sm:$0xff]  }
   0xf   : > { %386 = vmatprep.subr.bf16.mxu0 %v603_v5  ;;  %427 = vmatprep.subr.bf16.mxu1 %v605_v6  ;;  %v614_v12 = vld [vmem:[%s799_s1 + $0xa8] ss:$16 sps:$4 sm:$0xff]   ;;  %v615_v13 = vld [vmem:[%s799_s1 + $0x84] ss:$16 sps:$4 sm:$0xff]   ;;  %v617_v14 = vld [vmem:[%s799_s1 + $0x8c] ss:$16 sps:$4 sm:$0xff]  }
  0x10   : > { %v619_v15 = vld [vmem:[%s799_s1 + $0x80] ss:$16 sps:$4 sm:$0xff]   ;;  %v620_v16 = vld [vmem:[%s799_s1 + $0x88] ss:$16 sps:$4 sm:$0xff]   ;;  %v621_v17 = vld [vmem:[%s799_s1 + $0x64] ss:$16 sps:$4 sm:$0xff]  }
  0x11   : > { %v623_v18 = vld [vmem:[%s799_s1 + $0x6c] ss:$16 sps:$4 sm:$0xff]   ;;  %v625_v19 = vld [vmem:[%s799_s1 + $0x60] ss:$16 sps:$4 sm:$0xff]   ;;  %v626_v20 = vld [vmem:[%s799_s1 + $0x68] ss:$16 sps:$4 sm:$0xff]  }
  0x12   : > { %387 = vmatpush1.bf16.msra.mxu0 %v607_v7  ;;  %428 = vmatpush1.bf16.msra.mxu1 %v608_v8  ;;  %v627_v21 = vld [vmem:[%s799_s1 + $0x44] ss:$16 sps:$4 sm:$0xff]   ;;  %v629_v22 = vld [vmem:[%s799_s1 + $0x4c] ss:$16 sps:$4 sm:$0xff]   ;;  %v631_v23 = vld [vmem:[%s799_s1 + $0x40] ss:$16 sps:$4 sm:$0xff]  }
  0x13   : > { %388 = vmatprep.subr.bf16.mxu0 %v609_v9  ;;  %429 = vmatprep.subr.bf16.mxu1 %v611_v10  ;;  %v632_v24 = vld [vmem:[%s799_s1 + $0x48] ss:$16 sps:$4 sm:$0xff]   ;;  %v633_v25 = vld [vmem:[%s799_s1 + $0x24] ss:$16 sps:$4 sm:$0xff]   ;;  %v635_v26 = vld [vmem:[%s799_s1 + $0x2c] ss:$16 sps:$4 sm:$0xff]  }
  0x14   : > { %v637_v27 = vld [vmem:[%s799_s1 + $0x20] ss:$16 sps:$4 sm:$0xff]   ;;  %v638_v28 = vld [vmem:[%s799_s1 + $0x28] ss:$16 sps:$4 sm:$0xff]   ;;  %v639_v29 = vld [vmem:[%s799_s1 + $0x4] ss:$16 sps:$4 sm:$0xff]  }
  0x15   : > { %v641_v30 = vld [vmem:[%s799_s1 + $0xc] ss:$16 sps:$4 sm:$0xff]   ;;  %s545_s24 = sshll.u32 %s803_s13, 2  ;;  %v643_v31 = vld [vmem:[%s799_s1] ss:$16 sps:$4 sm:$0xff]   ;;  %v205_v35 = vshrl.u32 %v204_v34, 7 }
  0x16   : > { %389 = vmatpush1.bf16.msra.mxu0 %v613_v11  ;;  %430 = vmatpush1.bf16.msra.mxu1 %v614_v12  ;;  %v644_v32 = vld [vmem:[%s799_s1 + $0x8] ss:$16 sps:$4 sm:$0xff]   ;;  %s162_s4 = scalar_lea.vmem %s798_s0, %s545_s24  ;;  %v202_v40 = vld [vmem:[%s800_s2] sm:$0xf]  ;;  %s585_s7 = sshll.u32 %s803_s13, 4 }
  0x17   : > { %390 = vmatprep.subr.bf16.mxu0 %v615_v13  ;;  %431 = vmatprep.subr.bf16.mxu1 %v617_v14  ;;  %v169_v33 = vld [vmem:[%s162_s4] sm:$0xf]  ;;  %v206_v36 = vsub.s32 0, %v205_v35  ;;  %v214_v37 = vsub.s32 2, %v205_v35  ;;  %v210_v38 = vsub.s32 1, %v205_v35  ;;  %v218_v39 = vsub.s32 3, %v205_v35  ;;  %s167_s10 = scalar_lea.vmem %s801_s3, %s585_s7 }
  0x19   : > { %v207_v41 = vrot.slane %v202_v40, %v206_v36  ;;  %v215_v42 = vrot.slane %v202_v40, %v214_v37  ;;  %v211_v43 = vrot.slane %v202_v40, %v210_v38  ;;  %v219_v44 = vrot.slane %v202_v40, %v218_v39 }
  0x1a   : > { %391 = vmatpush1.bf16.msra.mxu0 %v619_v15  ;;  %432 = vmatpush1.bf16.msra.mxu1 %v620_v16 }
  0x1b   : > { %392 = vmatprep.subr.bf16.mxu0 %v621_v17  ;;  %433 = vmatprep.subr.bf16.mxu1 %v623_v18 }
  0x1e   : > { %393 = vmatpush1.bf16.msra.mxu0 %v625_v19  ;;  %434 = vmatpush1.bf16.msra.mxu1 %v626_v20 }
  0x1f   : > { %394 = vmatprep.subr.bf16.mxu0 %v627_v21  ;;  %435 = vmatprep.subr.bf16.mxu1 %v629_v22 }
  0x22   : > { %395 = vmatpush1.bf16.msra.mxu0 %v631_v23  ;;  %436 = vmatpush1.bf16.msra.mxu1 %v632_v24 }
  0x23   : > { %396 = vmatprep.subr.bf16.mxu0 %v633_v25  ;;  %437 = vmatprep.subr.bf16.mxu1 %v635_v26 }
  0x26   : > { %397 = vmatpush1.bf16.msra.mxu0 %v637_v27  ;;  %438 = vmatpush1.bf16.msra.mxu1 %v638_v28 }
  0x27   : > { %398 = vmatprep.subr.bf16.mxu0 %v639_v29  ;;  %439 = vmatprep.subr.bf16.mxu1 %v641_v30 }
  0x2a   : > { %399 = vmatpush1.bf16.msra.mxu0 %v643_v31  ;;  %440 = vmatpush1.bf16.msra.mxu1 %v644_v32 }
  0x2d   : > { %417 = vmatmul.mubr.bf16.vlgmr.msra.gmra.mxu0 %v169_v33  ;;  %458 = vmatmul.mubr.bf16.vlgmr.msra.gmra.mxu1 %v169_v33 }
  0xed   : > { %v418_v45 = vpop.f32.mrf.mxu0  ;;  %v459_v46 = vpop.f32.mrf.mxu1 }
  0xee   : > { %v419_v49 = vadd.f32 %v418_v45, %v207_v41  ;;  %v460_v50 = vadd.f32 %v459_v46, %v215_v42 }
  0xef   : > { %v420_v47 = vpop.f32.mrf.mxu0  ;;  %v461_v48 = vpop.f32.mrf.mxu1 }
  0xf0   : > { %v421_v51 = vadd.f32 %v420_v47, %v211_v43  ;;  %v462_v52 = vadd.f32 %v461_v48, %v219_v44 }
  0xf1   : > { %v422_v53 = vpop.f32.mrf.mxu0  ;;  %v463_v54 = vpop.f32.mrf.mxu1 }
  0xf2   : > { %v586_v55 = vpack.c.bf16 %v421_v51, %v419_v49  ;;  %v587_v56 = vpack.c.bf16 %v462_v52, %v460_v50 }
  0xf3   : > { %v423_v57 = vpop.f32.mrf.mxu0  ;;  %v464_v58 = vpop.f32.mrf.mxu1 }
  0xf4   : > { %476 = vst [vmem:[%s167_s10] sm:$0xff] %v586_v55  ;;  %582 = vst [vmem:[%s167_s10 + $0x8] sm:$0xff] %v587_v56 }
  0xf5 PF: > { %s13_s12 = sadd.s32 1, %s651_s12  }
  0xf6   : > { %p10_p4 = scmp.ge.s32.totalorder %s13_s12, 18  }
  0xf8   :  { %12 = sbr.rel (!%p10_p4) target bundleno = 1 (0x1), region = 63 }

</bundles_post_ra>
